<compile_context>
chip_gen: v5e
topology: v5e:2x2
jax: 0.10.0
libtpu: 0.0.40
codegen_flags: <defaults>
</compile_context>

<pallas_src>
import functools
import math

import jax
import jax.numpy as jnp
from jax import lax
from jax.experimental import pallas as pl
from jax.experimental.pallas import tpu as pltpu


# ----------------------------------------------------------------------------
# helpers
# ----------------------------------------------------------------------------
def _sel_matrix(n_out, n_in, offset):
    """M[r, c] = 1.0 iff c == (r + offset) // 2  (nearest-upsample selector)."""
    r = jnp.arange(n_out)[:, None]
    c = jnp.arange(n_in)[None, :]
    return (c == (r + offset) // 2).astype(jnp.float32)


def _pick_tile_h(h):
    # Small tiles so the test (H=16) exercises multiple grid steps / the halo
    # path.  Production: pick the largest divisor that keeps the double-
    # buffered tiles inside VMEM (v7x: 64 MiB physical).
    for cand in (8, 4, 2, 1):
        if h % cand == 0:
            return cand
    return h


# ----------------------------------------------------------------------------
# Kernel 1 (with_conv=True): fused  upsample2x -> pad1 -> conv3x3  per batch,
# tiled over output rows.  xp is the input pre-padded by 1 px; the upsampled
# window incl. conv halo is  V = L @ xin @ R  with 0/1 selection matrices.
# ----------------------------------------------------------------------------
def _up_conv_kernel(xp_ref, L_ref, R_ref, w_ref, b_ref, o_ref, upw_ref, *,
                    cin, cout, thi, tho, w2):
    t = pl.program_id(1)
    row0 = pl.multiple_of(t * thi, thi)

    L = L_ref[...]                       # (tho+2, thi+2)
    R = R_ref[...]                       # (W+2,  2W+2)

    # bias folded into the f32 accumulator init
    acc = [jnp.full((tho, w2), b_ref[co], dtype=jnp.float32) for co in range(cout)]

    for ci in range(cin):
        # padded-input rows needed for this output tile (+2-row halo)
        xin = xp_ref[ci, pl.ds(row0, thi + 2), :]            # (thi+2, W+2)
        # upsampled window (incl. 1-px conv halo) via MXU selection matmuls
        hp = jnp.dot(xin, R, preferred_element_type=jnp.float32)   # (thi+2, 2W+2)
        upw_ref[...] = jnp.dot(L, hp, preferred_element_type=jnp.float32)

        for kh in range(3):
            for kw in range(3):
                win = upw_ref[kh:kh + tho, kw:kw + w2]       # (tho, 2W)
                for co in range(cout):
                    wk = w_ref[((co * cin + ci) * 3 + kh) * 3 + kw]  # SMEM scalar
                    acc[co] = acc[co] + wk * win

    for co in range(cout):
        o_ref[co] = acc[co].astype(o_ref.dtype)


def upsample2x_conv3x3_nchw(x, w_oihw, bias, *, tile_h_in=None):
    n, cin, h, w = x.shape
    cout = w_oihw.shape[0]
    thi = _pick_tile_h(h) if tile_h_in is None else tile_h_in
    tho, w2 = 2 * thi, 2 * w

    # 1-px halo at *input* resolution (much cheaper than padding the 4x tensor).
    # TODO(synk): for very large images also tile the padded input (pl.Element
    # halo indexing) instead of keeping the full per-batch image in VMEM.
    xp = jnp.pad(x, ((0, 0), (0, 0), (1, 1), (1, 1)))

    L = _sel_matrix(tho + 2, thi + 2, 1)          # row interleave + halo
    R = _sel_matrix(w2 + 2, w + 2, 1).T           # col interleave + halo
    w_flat = w_oihw.astype(jnp.float32).reshape(-1)
    b_flat = bias.astype(jnp.float32).reshape(-1)

    kern = functools.partial(_up_conv_kernel, cin=cin, cout=cout,
                             thi=thi, tho=tho, w2=w2)
    return pl.pallas_call(
        kern,
        out_shape=jax.ShapeDtypeStruct((n, cout, 2 * h, w2), x.dtype),
        grid=(n, h // thi),
        in_specs=[
            pl.BlockSpec((None, cin, h + 2, w + 2), lambda b, t: (b, 0, 0, 0)),
            pl.BlockSpec((tho + 2, thi + 2), lambda b, t: (0, 0)),
            pl.BlockSpec((w + 2, w2 + 2), lambda b, t: (0, 0)),
            pl.BlockSpec(memory_space=pltpu.MemorySpace.SMEM),   # conv weights
            pl.BlockSpec(memory_space=pltpu.MemorySpace.SMEM),   # bias
        ],
        out_specs=pl.BlockSpec((None, cout, tho, w2), lambda b, t: (b, 0, t, 0)),
        scratch_shapes=[pltpu.VMEM((tho + 2, w2 + 2), jnp.float32)],
        compiler_params=pltpu.CompilerParams(
            dimension_semantics=("parallel", "parallel")),
    )(xp, L, R, w_flat, b_flat)


# ----------------------------------------------------------------------------
# Kernel 2 (with_conv=False): pure nearest 2x upsample, written directly in the
# final (n, c, 2h, 2w) layout (no parity intermediate, no XLA transpose).
# ----------------------------------------------------------------------------
def _up_kernel(x_ref, L_ref, R_ref, o_ref, *, ch):
    L = L_ref[...]                       # (tho, thi)
    R = R_ref[...]                       # (W,   2W)
    for c in range(ch):
        up_h = jnp.dot(L, x_ref[c], preferred_element_type=jnp.float32)
        up = jnp.dot(up_h, R, preferred_element_type=jnp.float32)
        o_ref[c] = up.astype(o_ref.dtype)


def nearest_upsample_2x_nchw(x, *, tile_h_in=None):
    n, c, h, w = x.shape
    thi = _pick_tile_h(h) if tile_h_in is None else tile_h_in
    tho, w2 = 2 * thi, 2 * w
    L0 = _sel_matrix(tho, thi, 0)
    R0 = _sel_matrix(w2, w, 0).T

    kern = functools.partial(_up_kernel, ch=c)
    return pl.pallas_call(
        kern,
        out_shape=jax.ShapeDtypeStruct((n, c, 2 * h, w2), x.dtype),
        grid=(n, h // thi),
        in_specs=[
            pl.BlockSpec((None, c, thi, w), lambda b, t: (b, 0, t, 0)),
            pl.BlockSpec((tho, thi), lambda b, t: (0, 0)),
            pl.BlockSpec((w, w2), lambda b, t: (0, 0)),
        ],
        out_specs=pl.BlockSpec((None, c, tho, w2), lambda b, t: (b, 0, t, 0)),
        compiler_params=pltpu.CompilerParams(
            dimension_semantics=("parallel", "parallel")),
    )(x, L0, R0)


# ----------------------------------------------------------------------------
# Module wrapper (mirrors the PyTorch Upsample module, NCHW in / NCHW out).
# ----------------------------------------------------------------------------
class Upsample:
    def __init__(self, in_channels, with_conv, key):
        self.with_conv = with_conv
        self.w_oihw = None
        self.bias = None
        if self.with_conv:
            cout = in_channels // 2
            fan_in = in_channels * 3 * 3
            bound = 1.0 / math.sqrt(fan_in)  # torch Conv2d default init
            kw_, kb_ = jax.random.split(key)
            self.w_oihw = jax.random.uniform(
                kw_, (cout, in_channels, 3, 3), jnp.float32, -bound, bound)
            self.bias = jax.random.uniform(kb_, (cout,), jnp.float32, -bound, bound)

    def __call__(self, x_nchw):
        if self.with_conv:
            return upsample2x_conv3x3_nchw(x_nchw, self.w_oihw, self.bias)
        return nearest_upsample_2x_nchw(x_nchw)


def _reference(x_nchw, module: Upsample):
    up = jnp.repeat(jnp.repeat(x_nchw, 2, axis=2), 2, axis=3)
    if not module.with_conv:
        return up
    out = lax.conv_general_dilated(
        up, module.w_oihw, window_strides=(1, 1), padding="SAME",
        dimension_numbers=("NCHW", "OIHW", "NCHW"),
        precision=lax.Precision.HIGHEST)
    return out + module.bias[None, :, None, None]


if __name__ == "__main__":
    key = jax.random.PRNGKey(0)
    k_x, k_params = jax.random.split(key)

    N, C, H, W = 2, 4, 16, 16
    x = jax.random.normal(k_x, (N, C, H, W), dtype=jnp.float32)

    # with_conv=True path (fused upsample + 3x3 conv that halves channels)
    mod = Upsample(in_channels=C, with_conv=True, key=k_params)
    y = jax.block_until_ready(mod(x))
    assert y.shape == (N, C // 2, 2 * H, 2 * W), y.shape
    y_ref = _reference(x, mod)
    # MXU-based interleave is exact up to <~1e-5 f32-matmul-path effects.
    assert jnp.allclose(y, y_ref, atol=1e-4, rtol=1e-4), (
        "conv path mismatch, max |err| = %e"
        % float(jnp.max(jnp.abs(y - y_ref))))

    # with_conv=False path (pure nearest upsample)
    mod_nc = Upsample(in_channels=C, with_conv=False, key=k_params)
    y2 = jax.block_until_ready(mod_nc(x))
    assert y2.shape == (N, C, 2 * H, 2 * W), y2.shape
    y2_ref = _reference(x, mod_nc)
    assert jnp.allclose(y2, y2_ref, atol=1e-4, rtol=1e-4), (
        "upsample mismatch, max |err| = %e"
        % float(jnp.max(jnp.abs(y2 - y2_ref))))

    print("KERNEL_OK")
</pallas_src>

<mosaic_0001>
module attributes {stable_mosaic.version = 11 : i64} {
  func.func @_up_conv_kernel(%arg0: i32, %arg1: i32, %arg2: memref<1x4x18x18xf32, #tpu.memory_space<vmem>>, %arg3: memref<18x10xf32, #tpu.memory_space<vmem>>, %arg4: memref<18x34xf32, #tpu.memory_space<vmem>>, %arg5: memref<72xf32, #tpu.memory_space<smem>>, %arg6: memref<2xf32, #tpu.memory_space<smem>>, %arg7: memref<1x2x16x32xf32, #tpu.memory_space<vmem>>, %arg8: memref<18x34xf32, #tpu.memory_space<vmem>>) attributes {dimension_semantics = [#tpu.dimension_semantics<parallel>, #tpu.dimension_semantics<parallel>], iteration_bounds = array<i64: 2, 2>, scalar_prefetch = 0 : i64, scratch_operands = 1 : i64, tpu.core_type = #tpu.core_type<tc>, window_params = [{transform_indices = @transform_0, window_bounds = array<i64: 1, 4, 18, 18>}, {pipeline_mode = #tpu.pipeline_mode<synchronous>, transform_indices = @transform_1, window_bounds = array<i64: 18, 10>}, {pipeline_mode = #tpu.pipeline_mode<synchronous>, transform_indices = @transform_2, window_bounds = array<i64: 18, 34>}, {transform_indices = @transform_3, window_bounds = array<i64: 72>}, {transform_indices = @transform_4, window_bounds = array<i64: 2>}, {transform_indices = @transform_5, window_bounds = array<i64: 1, 2, 16, 32>}]} {
    %c8_i32 = arith.constant 8 : i32
    %0 = arith.muli %arg1, %c8_i32 : i32
    %1 = tpu.assume_multiple %0, 8 : i32
    %c0 = arith.constant 0 : index
    %c0_0 = arith.constant 0 : index
    %2 = vector.load %arg3[%c0, %c0_0] : memref<18x10xf32, #tpu.memory_space<vmem>>, vector<18x10xf32>
    %c0_1 = arith.constant 0 : index
    %c0_2 = arith.constant 0 : index
    %3 = vector.load %arg4[%c0_1, %c0_2] : memref<18x34xf32, #tpu.memory_space<vmem>>, vector<18x34xf32>
    %c0_3 = arith.constant 0 : index
    %4 = memref.load %arg6[%c0_3] : memref<2xf32, #tpu.memory_space<smem>>
    %5 = vector.broadcast %4 : f32 to vector<16x32xf32>
    %c1 = arith.constant 1 : index
    %6 = memref.load %arg6[%c1] : memref<2xf32, #tpu.memory_space<smem>>
    %7 = vector.broadcast %6 : f32 to vector<16x32xf32>
    %c0_4 = arith.constant 0 : index
    %c0_5 = arith.constant 0 : index
    %8 = arith.index_cast %1 : i32 to index
    %c0_6 = arith.constant 0 : index
    %9 = vector.load %arg2[%c0_4, %c0_5, %8, %c0_6] : memref<1x4x18x18xf32, #tpu.memory_space<vmem>>, vector<1x1x10x18xf32>
    %10 = vector.shape_cast %9 : vector<1x1x10x18xf32> to vector<10x18xf32>
    %cst = arith.constant dense<0.000000e+00> : vector<10x34xf32>
    %11 = tpu.matmul %10, %3, %cst {dimension_numbers = #tpu.dot_dimension_numbers<[1], [0], [0], [1], [0, 0, 1, 1], [], []>} : vector<10x18xf32>, vector<18x34xf32>, vector<10x34xf32> -> vector<10x34xf32>
    %cst_7 = arith.constant dense<0.000000e+00> : vector<18x34xf32>
    %12 = tpu.matmul %2, %11, %cst_7 {dimension_numbers = #tpu.dot_dimension_numbers<[1], [0], [0], [1], [0, 0, 1, 1], [], []>} : vector<18x10xf32>, vector<10x34xf32>, vector<18x34xf32> -> vector<18x34xf32>
    %c0_8 = arith.constant 0 : index
    %c0_9 = arith.constant 0 : index
    %13 = vector.load %arg8[%c0_8, %c0_9] : memref<18x34xf32, #tpu.memory_space<vmem>>, vector<18x34xf32>
    tpu.vector_store %arg8[%c0_8, %c0_9], %12 {strides = array<i32>} : memref<18x34xf32, #tpu.memory_space<vmem>>, vector<18x34xf32>,
    %c0_10 = arith.constant 0 : index
    %c0_11 = arith.constant 0 : index
    %14 = vector.load %arg8[%c0_10, %c0_11] : memref<18x34xf32, #tpu.memory_space<vmem>>, vector<16x32xf32>
    %c0_12 = arith.constant 0 : index
    %15 = memref.load %arg5[%c0_12] : memref<72xf32, #tpu.memory_space<smem>>
    %16 = vector.broadcast %15 : f32 to vector<16x32xf32>
    %17 = arith.mulf %16, %14 : vector<16x32xf32>
    %18 = arith.addf %5, %17 : vector<16x32xf32>
    %c36 = arith.constant 36 : index
    %19 = memref.load %arg5[%c36] : memref<72xf32, #tpu.memory_space<smem>>
    %20 = vector.broadcast %19 : f32 to vector<16x32xf32>
    %21 = arith.mulf %20, %14 : vector<16x32xf32>
    %22 = arith.addf %7, %21 : vector<16x32xf32>
    %c0_13 = arith.constant 0 : index
    %c1_14 = arith.constant 1 : index
    %23 = vector.load %arg8[%c0_13, %c1_14] : memref<18x34xf32, #tpu.memory_space<vmem>>, vector<16x32xf32>
    %c1_15 = arith.constant 1 : index
    %24 = memref.load %arg5[%c1_15] : memref<72xf32, #tpu.memory_space<smem>>
    %25 = vector.broadcast %24 : f32 to vector<16x32xf32>
    %26 = arith.mulf %25, %23 : vector<16x32xf32>
    %27 = arith.addf %18, %26 : vector<16x32xf32>
    %c37 = arith.constant 37 : index
    %28 = memref.load %arg5[%c37] : memref<72xf32, #tpu.memory_space<smem>>
    %29 = vector.broadcast %28 : f32 to vector<16x32xf32>
    %30 = arith.mulf %29, %23 : vector<16x32xf32>
    %31 = arith.addf %22, %30 : vector<16x32xf32>
    %c0_16 = arith.constant 0 : index
    %c2 = arith.constant 2 : index
    %32 = vector.load %arg8[%c0_16, %c2] : memref<18x34xf32, #tpu.memory_space<vmem>>, vector<16x32xf32>
    %c2_17 = arith.constant 2 : index
    %33 = memref.load %arg5[%c2_17] : memref<72xf32, #tpu.memory_space<smem>>
    %34 = vector.broadcast %33 : f32 to vector<16x32xf32>
    %35 = arith.mulf %34, %32 : vector<16x32xf32>
    %36 = arith.addf %27, %35 : vector<16x32xf32>
    %c38 = arith.constant 38 : index
    %37 = memref.load %arg5[%c38] : memref<72xf32, #tpu.memory_space<smem>>
    %38 = vector.broadcast %37 : f32 to vector<16x32xf32>
    %39 = arith.mulf %38, %32 : vector<16x32xf32>
    %40 = arith.addf %31, %39 : vector<16x32xf32>
    %c1_18 = arith.constant 1 : index
    %c0_19 = arith.constant 0 : index
    %41 = vector.load %arg8[%c1_18, %c0_19] : memref<18x34xf32, #tpu.memory_space<vmem>>, vector<16x32xf32>
    %c3 = arith.constant 3 : index
    %42 = memref.load %arg5[%c3] : memref<72xf32, #tpu.memory_space<smem>>
    %43 = vector.broadcast %42 : f32 to vector<16x32xf32>
    %44 = arith.mulf %43, %41 : vector<16x32xf32>
    %45 = arith.addf %36, %44 : vector<16x32xf32>
    %c39 = arith.constant 39 : index
    %46 = memref.load %arg5[%c39] : memref<72xf32, #tpu.memory_space<smem>>
    %47 = vector.broadcast %46 : f32 to vector<16x32xf32>
    %48 = arith.mulf %47, %41 : vector<16x32xf32>
    %49 = arith.addf %40, %48 : vector<16x32xf32>
    %c1_20 = arith.constant 1 : index
    %c1_21 = arith.constant 1 : index
    %50 = vector.load %arg8[%c1_20, %c1_21] : memref<18x34xf32, #tpu.memory_space<vmem>>, vector<16x32xf32>
    %c4 = arith.constant 4 : index
    %51 = memref.load %arg5[%c4] : memref<72xf32, #tpu.memory_space<smem>>
    %52 = vector.broadcast %51 : f32 to vector<16x32xf32>
    %53 = arith.mulf %52, %50 : vector<16x32xf32>
    %54 = arith.addf %45, %53 : vector<16x32xf32>
    %c40 = arith.constant 40 : index
    %55 = memref.load %arg5[%c40] : memref<72xf32, #tpu.memory_space<smem>>
    %56 = vector.broadcast %55 : f32 to vector<16x32xf32>
    %57 = arith.mulf %56, %50 : vector<16x32xf32>
    %58 = arith.addf %49, %57 : vector<16x32xf32>
    %c1_22 = arith.constant 1 : index
    %c2_23 = arith.constant 2 : index
    %59 = vector.load %arg8[%c1_22, %c2_23] : memref<18x34xf32, #tpu.memory_space<vmem>>, vector<16x32xf32>
    %c5 = arith.constant 5 : index
    %60 = memref.load %arg5[%c5] : memref<72xf32, #tpu.memory_space<smem>>
    %61 = vector.broadcast %60 : f32 to vector<16x32xf32>
    %62 = arith.mulf %61, %59 : vector<16x32xf32>
    %63 = arith.addf %54, %62 : vector<16x32xf32>
    %c41 = arith.constant 41 : index
    %64 = memref.load %arg5[%c41] : memref<72xf32, #tpu.memory_space<smem>>
    %65 = vector.broadcast %64 : f32 to vector<16x32xf32>
    %66 = arith.mulf %65, %59 : vector<16x32xf32>
    %67 = arith.addf %58, %66 : vector<16x32xf32>
    %c2_24 = arith.constant 2 : index
    %c0_25 = arith.constant 0 : index
    %68 = vector.load %arg8[%c2_24, %c0_25] : memref<18x34xf32, #tpu.memory_space<vmem>>, vector<16x32xf32>
    %c6 = arith.constant 6 : index
    %69 = memref.load %arg5[%c6] : memref<72xf32, #tpu.memory_space<smem>>
    %70 = vector.broadcast %69 : f32 to vector<16x32xf32>
    %71 = arith.mulf %70, %68 : vector<16x32xf32>
    %72 = arith.addf %63, %71 : vector<16x32xf32>
    %c42 = arith.constant 42 : index
    %73 = memref.load %arg5[%c42] : memref<72xf32, #tpu.memory_space<smem>>
    %74 = vector.broadcast %73 : f32 to vector<16x32xf32>
    %75 = arith.mulf %74, %68 : vector<16x32xf32>
    %76 = arith.addf %67, %75 : vector<16x32xf32>
    %c2_26 = arith.constant 2 : index
    %c1_27 = arith.constant 1 : index
    %77 = vector.load %arg8[%c2_26, %c1_27] : memref<18x34xf32, #tpu.memory_space<vmem>>, vector<16x32xf32>
    %c7 = arith.constant 7 : index
    %78 = memref.load %arg5[%c7] : memref<72xf32, #tpu.memory_space<smem>>
    %79 = vector.broadcast %78 : f32 to vector<16x32xf32>
    %80 = arith.mulf %79, %77 : vector<16x32xf32>
    %81 = arith.addf %72, %80 : vector<16x32xf32>
    %c43 = arith.constant 43 : index
    %82 = memref.load %arg5[%c43] : memref<72xf32, #tpu.memory_space<smem>>
    %83 = vector.broadcast %82 : f32 to vector<16x32xf32>
    %84 = arith.mulf %83, %77 : vector<16x32xf32>
    %85 = arith.addf %76, %84 : vector<16x32xf32>
    %c2_28 = arith.constant 2 : index
    %c2_29 = arith.constant 2 : index
    %86 = vector.load %arg8[%c2_28, %c2_29] : memref<18x34xf32, #tpu.memory_space<vmem>>, vector<16x32xf32>
    %c8 = arith.constant 8 : index
    %87 = memref.load %arg5[%c8] : memref<72xf32, #tpu.memory_space<smem>>
    %88 = vector.broadcast %87 : f32 to vector<16x32xf32>
    %89 = arith.mulf %88, %86 : vector<16x32xf32>
    %90 = arith.addf %81, %89 : vector<16x32xf32>
    %c44 = arith.constant 44 : index
    %91 = memref.load %arg5[%c44] : memref<72xf32, #tpu.memory_space<smem>>
    %92 = vector.broadcast %91 : f32 to vector<16x32xf32>
    %93 = arith.mulf %92, %86 : vector<16x32xf32>
    %94 = arith.addf %85, %93 : vector<16x32xf32>
    %c0_30 = arith.constant 0 : index
    %c1_31 = arith.constant 1 : index
    %95 = arith.index_cast %1 : i32 to index
    %c0_32 = arith.constant 0 : index
    %96 = vector.load %arg2[%c0_30, %c1_31, %95, %c0_32] : memref<1x4x18x18xf32, #tpu.memory_space<vmem>>, vector<1x1x10x18xf32>
    %97 = vector.shape_cast %96 : vector<1x1x10x18xf32> to vector<10x18xf32>
    %cst_33 = arith.constant dense<0.000000e+00> : vector<10x34xf32>
    %98 = tpu.matmul %97, %3, %cst_33 {dimension_numbers = #tpu.dot_dimension_numbers<[1], [0], [0], [1], [0, 0, 1, 1], [], []>} : vector<10x18xf32>, vector<18x34xf32>, vector<10x34xf32> -> vector<10x34xf32>
    %cst_34 = arith.constant dense<0.000000e+00> : vector<18x34xf32>
    %99 = tpu.matmul %2, %98, %cst_34 {dimension_numbers = #tpu.dot_dimension_numbers<[1], [0], [0], [1], [0, 0, 1, 1], [], []>} : vector<18x10xf32>, vector<10x34xf32>, vector<18x34xf32> -> vector<18x34xf32>
    %c0_35 = arith.constant 0 : index
    %c0_36 = arith.constant 0 : index
    %100 = vector.load %arg8[%c0_35, %c0_36] : memref<18x34xf32, #tpu.memory_space<vmem>>, vector<18x34xf32>
    tpu.vector_store %arg8[%c0_35, %c0_36], %99 {strides = array<i32>} : memref<18x34xf32, #tpu.memory_space<vmem>>, vector<18x34xf32>,
    %c0_37 = arith.constant 0 : index
    %c0_38 = arith.constant 0 : index
    %101 = vector.load %arg8[%c0_37, %c0_38] : memref<18x34xf32, #tpu.memory_space<vmem>>, vector<16x32xf32>
    %c9 = arith.constant 9 : index
    %102 = memref.load %arg5[%c9] : memref<72xf32, #tpu.memory_space<smem>>
    %103 = vector.broadcast %102 : f32 to vector<16x32xf32>
    %104 = arith.mulf %103, %101 : vector<16x32xf32>
    %105 = arith.addf %90, %104 : vector<16x32xf32>
    %c45 = arith.constant 45 : index
    %106 = memref.load %arg5[%c45] : memref<72xf32, #tpu.memory_space<smem>>
    %107 = vector.broadcast %106 : f32 to vector<16x32xf32>
    %108 = arith.mulf %107, %101 : vector<16x32xf32>
    %109 = arith.addf %94, %108 : vector<16x32xf32>
    %c0_39 = arith.constant 0 : index
    %c1_40 = arith.constant 1 : index
    %110 = vector.load %arg8[%c0_39, %c1_40] : memref<18x34xf32, #tpu.memory_space<vmem>>, vector<16x32xf32>
    %c10 = arith.constant 10 : index
    %111 = memref.load %arg5[%c10] : memref<72xf32, #tpu.memory_space<smem>>
    %112 = vector.broadcast %111 : f32 to vector<16x32xf32>
    %113 = arith.mulf %112, %110 : vector<16x32xf32>
    %114 = arith.addf %105, %113 : vector<16x32xf32>
    %c46 = arith.constant 46 : index
    %115 = memref.load %arg5[%c46] : memref<72xf32, #tpu.memory_space<smem>>
    %116 = vector.broadcast %115 : f32 to vector<16x32xf32>
    %117 = arith.mulf %116, %110 : vector<16x32xf32>
    %118 = arith.addf %109, %117 : vector<16x32xf32>
    %c0_41 = arith.constant 0 : index
    %c2_42 = arith.constant 2 : index
    %119 = vector.load %arg8[%c0_41, %c2_42] : memref<18x34xf32, #tpu.memory_space<vmem>>, vector<16x32xf32>
    %c11 = arith.constant 11 : index
    %120 = memref.load %arg5[%c11] : memref<72xf32, #tpu.memory_space<smem>>
    %121 = vector.broadcast %120 : f32 to vector<16x32xf32>
    %122 = arith.mulf %121, %119 : vector<16x32xf32>
    %123 = arith.addf %114, %122 : vector<16x32xf32>
    %c47 = arith.constant 47 : index
    %124 = memref.load %arg5[%c47] : memref<72xf32, #tpu.memory_space<smem>>
    %125 = vector.broadcast %124 : f32 to vector<16x32xf32>
    %126 = arith.mulf %125, %119 : vector<16x32xf32>
    %127 = arith.addf %118, %126 : vector<16x32xf32>
    %c1_43 = arith.constant 1 : index
    %c0_44 = arith.constant 0 : index
    %128 = vector.load %arg8[%c1_43, %c0_44] : memref<18x34xf32, #tpu.memory_space<vmem>>, vector<16x32xf32>
    %c12 = arith.constant 12 : index
    %129 = memref.load %arg5[%c12] : memref<72xf32, #tpu.memory_space<smem>>
    %130 = vector.broadcast %129 : f32 to vector<16x32xf32>
    %131 = arith.mulf %130, %128 : vector<16x32xf32>
    %132 = arith.addf %123, %131 : vector<16x32xf32>
    %c48 = arith.constant 48 : index
    %133 = memref.load %arg5[%c48] : memref<72xf32, #tpu.memory_space<smem>>
    %134 = vector.broadcast %133 : f32 to vector<16x32xf32>
    %135 = arith.mulf %134, %128 : vector<16x32xf32>
    %136 = arith.addf %127, %135 : vector<16x32xf32>
    %c1_45 = arith.constant 1 : index
    %c1_46 = arith.constant 1 : index
    %137 = vector.load %arg8[%c1_45, %c1_46] : memref<18x34xf32, #tpu.memory_space<vmem>>, vector<16x32xf32>
    %c13 = arith.constant 13 : index
    %138 = memref.load %arg5[%c13] : memref<72xf32, #tpu.memory_space<smem>>
    %139 = vector.broadcast %138 : f32 to vector<16x32xf32>
    %140 = arith.mulf %139, %137 : vector<16x32xf32>
    %141 = arith.addf %132, %140 : vector<16x32xf32>
    %c49 = arith.constant 49 : index
    %142 = memref.load %arg5[%c49] : memref<72xf32, #tpu.memory_space<smem>>
    %143 = vector.broadcast %142 : f32 to vector<16x32xf32>
    %144 = arith.mulf %143, %137 : vector<16x32xf32>
    %145 = arith.addf %136, %144 : vector<16x32xf32>
    %c1_47 = arith.constant 1 : index
    %c2_48 = arith.constant 2 : index
    %146 = vector.load %arg8[%c1_47, %c2_48] : memref<18x34xf32, #tpu.memory_space<vmem>>, vector<16x32xf32>
    %c14 = arith.constant 14 : index
    %147 = memref.load %arg5[%c14] : memref<72xf32, #tpu.memory_space<smem>>
    %148 = vector.broadcast %147 : f32 to vector<16x32xf32>
    %149 = arith.mulf %148, %146 : vector<16x32xf32>
    %150 = arith.addf %141, %149 : vector<16x32xf32>
    %c50 = arith.constant 50 : index
    %151 = memref.load %arg5[%c50] : memref<72xf32, #tpu.memory_space<smem>>
    %152 = vector.broadcast %151 : f32 to vector<16x32xf32>
    %153 = arith.mulf %152, %146 : vector<16x32xf32>
    %154 = arith.addf %145, %153 : vector<16x32xf32>
    %c2_49 = arith.constant 2 : index
    %c0_50 = arith.constant 0 : index
    %155 = vector.load %arg8[%c2_49, %c0_50] : memref<18x34xf32, #tpu.memory_space<vmem>>, vector<16x32xf32>
    %c15 = arith.constant 15 : index
    %156 = memref.load %arg5[%c15] : memref<72xf32, #tpu.memory_space<smem>>
    %157 = vector.broadcast %156 : f32 to vector<16x32xf32>
    %158 = arith.mulf %157, %155 : vector<16x32xf32>
    %159 = arith.addf %150, %158 : vector<16x32xf32>
    %c51 = arith.constant 51 : index
    %160 = memref.load %arg5[%c51] : memref<72xf32, #tpu.memory_space<smem>>
    %161 = vector.broadcast %160 : f32 to vector<16x32xf32>
    %162 = arith.mulf %161, %155 : vector<16x32xf32>
    %163 = arith.addf %154, %162 : vector<16x32xf32>
    %c2_51 = arith.constant 2 : index
    %c1_52 = arith.constant 1 : index
    %164 = vector.load %arg8[%c2_51, %c1_52] : memref<18x34xf32, #tpu.memory_space<vmem>>, vector<16x32xf32>
    %c16 = arith.constant 16 : index
    %165 = memref.load %arg5[%c16] : memref<72xf32, #tpu.memory_space<smem>>
    %166 = vector.broadcast %165 : f32 to vector<16x32xf32>
    %167 = arith.mulf %166, %164 : vector<16x32xf32>
    %168 = arith.addf %159, %167 : vector<16x32xf32>
    %c52 = arith.constant 52 : index
    %169 = memref.load %arg5[%c52] : memref<72xf32, #tpu.memory_space<smem>>
    %170 = vector.broadcast %169 : f32 to vector<16x32xf32>
    %171 = arith.mulf %170, %164 : vector<16x32xf32>
    %172 = arith.addf %163, %171 : vector<16x32xf32>
    %c2_53 = arith.constant 2 : index
    %c2_54 = arith.constant 2 : index
    %173 = vector.load %arg8[%c2_53, %c2_54] : memref<18x34xf32, #tpu.memory_space<vmem>>, vector<16x32xf32>
    %c17 = arith.constant 17 : index
    %174 = memref.load %arg5[%c17] : memref<72xf32, #tpu.memory_space<smem>>
    %175 = vector.broadcast %174 : f32 to vector<16x32xf32>
    %176 = arith.mulf %175, %173 : vector<16x32xf32>
    %177 = arith.addf %168, %176 : vector<16x32xf32>
    %c53 = arith.constant 53 : index
    %178 = memref.load %arg5[%c53] : memref<72xf32, #tpu.memory_space<smem>>
    %179 = vector.broadcast %178 : f32 to vector<16x32xf32>
    %180 = arith.mulf %179, %173 : vector<16x32xf32>
    %181 = arith.addf %172, %180 : vector<16x32xf32>
    %c0_55 = arith.constant 0 : index
    %c2_56 = arith.constant 2 : index
    %182 = arith.index_cast %1 : i32 to index
    %c0_57 = arith.constant 0 : index
    %183 = vector.load %arg2[%c0_55, %c2_56, %182, %c0_57] : memref<1x4x18x18xf32, #tpu.memory_space<vmem>>, vector<1x1x10x18xf32>
    %184 = vector.shape_cast %183 : vector<1x1x10x18xf32> to vector<10x18xf32>
    %cst_58 = arith.constant dense<0.000000e+00> : vector<10x34xf32>
    %185 = tpu.matmul %184, %3, %cst_58 {dimension_numbers = #tpu.dot_dimension_numbers<[1], [0], [0], [1], [0, 0, 1, 1], [], []>} : vector<10x18xf32>, vector<18x34xf32>, vector<10x34xf32> -> vector<10x34xf32>
    %cst_59 = arith.constant dense<0.000000e+00> : vector<18x34xf32>
    %186 = tpu.matmul %2, %185, %cst_59 {dimension_numbers = #tpu.dot_dimension_numbers<[1], [0], [0], [1], [0, 0, 1, 1], [], []>} : vector<18x10xf32>, vector<10x34xf32>, vector<18x34xf32> -> vector<18x34xf32>
    %c0_60 = arith.constant 0 : index
    %c0_61 = arith.constant 0 : index
    %187 = vector.load %arg8[%c0_60, %c0_61] : memref<18x34xf32, #tpu.memory_space<vmem>>, vector<18x34xf32>
    tpu.vector_store %arg8[%c0_60, %c0_61], %186 {strides = array<i32>} : memref<18x34xf32, #tpu.memory_space<vmem>>, vector<18x34xf32>,
    %c0_62 = arith.constant 0 : index
    %c0_63 = arith.constant 0 : index
    %188 = vector.load %arg8[%c0_62, %c0_63] : memref<18x34xf32, #tpu.memory_space<vmem>>, vector<16x32xf32>
    %c18 = arith.constant 18 : index
    %189 = memref.load %arg5[%c18] : memref<72xf32, #tpu.memory_space<smem>>
    %190 = vector.broadcast %189 : f32 to vector<16x32xf32>
    %191 = arith.mulf %190, %188 : vector<16x32xf32>
    %192 = arith.addf %177, %191 : vector<16x32xf32>
    %c54 = arith.constant 54 : index
    %193 = memref.load %arg5[%c54] : memref<72xf32, #tpu.memory_space<smem>>
    %194 = vector.broadcast %193 : f32 to vector<16x32xf32>
    %195 = arith.mulf %194, %188 : vector<16x32xf32>
    %196 = arith.addf %181, %195 : vector<16x32xf32>
    %c0_64 = arith.constant 0 : index
    %c1_65 = arith.constant 1 : index
    %197 = vector.load %arg8[%c0_64, %c1_65] : memref<18x34xf32, #tpu.memory_space<vmem>>, vector<16x32xf32>
    %c19 = arith.constant 19 : index
    %198 = memref.load %arg5[%c19] : memref<72xf32, #tpu.memory_space<smem>>
    %199 = vector.broadcast %198 : f32 to vector<16x32xf32>
    %200 = arith.mulf %199, %197 : vector<16x32xf32>
    %201 = arith.addf %192, %200 : vector<16x32xf32>
    %c55 = arith.constant 55 : index
    %202 = memref.load %arg5[%c55] : memref<72xf32, #tpu.memory_space<smem>>
    %203 = vector.broadcast %202 : f32 to vector<16x32xf32>
    %204 = arith.mulf %203, %197 : vector<16x32xf32>
    %205 = arith.addf %196, %204 : vector<16x32xf32>
    %c0_66 = arith.constant 0 : index
    %c2_67 = arith.constant 2 : index
    %206 = vector.load %arg8[%c0_66, %c2_67] : memref<18x34xf32, #tpu.memory_space<vmem>>, vector<16x32xf32>
    %c20 = arith.constant 20 : index
    %207 = memref.load %arg5[%c20] : memref<72xf32, #tpu.memory_space<smem>>
    %208 = vector.broadcast %207 : f32 to vector<16x32xf32>
    %209 = arith.mulf %208, %206 : vector<16x32xf32>
    %210 = arith.addf %201, %209 : vector<16x32xf32>
    %c56 = arith.constant 56 : index
    %211 = memref.load %arg5[%c56] : memref<72xf32, #tpu.memory_space<smem>>
    %212 = vector.broadcast %211 : f32 to vector<16x32xf32>
    %213 = arith.mulf %212, %206 : vector<16x32xf32>
    %214 = arith.addf %205, %213 : vector<16x32xf32>
    %c1_68 = arith.constant 1 : index
    %c0_69 = arith.constant 0 : index
    %215 = vector.load %arg8[%c1_68, %c0_69] : memref<18x34xf32, #tpu.memory_space<vmem>>, vector<16x32xf32>
    %c21 = arith.constant 21 : index
    %216 = memref.load %arg5[%c21] : memref<72xf32, #tpu.memory_space<smem>>
    %217 = vector.broadcast %216 : f32 to vector<16x32xf32>
    %218 = arith.mulf %217, %215 : vector<16x32xf32>
    %219 = arith.addf %210, %218 : vector<16x32xf32>
    %c57 = arith.constant 57 : index
    %220 = memref.load %arg5[%c57] : memref<72xf32, #tpu.memory_space<smem>>
    %221 = vector.broadcast %220 : f32 to vector<16x32xf32>
    %222 = arith.mulf %221, %215 : vector<16x32xf32>
    %223 = arith.addf %214, %222 : vector<16x32xf32>
    %c1_70 = arith.constant 1 : index
    %c1_71 = arith.constant 1 : index
    %224 = vector.load %arg8[%c1_70, %c1_71] : memref<18x34xf32, #tpu.memory_space<vmem>>, vector<16x32xf32>
    %c22 = arith.constant 22 : index
    %225 = memref.load %arg5[%c22] : memref<72xf32, #tpu.memory_space<smem>>
    %226 = vector.broadcast %225 : f32 to vector<16x32xf32>
    %227 = arith.mulf %226, %224 : vector<16x32xf32>
    %228 = arith.addf %219, %227 : vector<16x32xf32>
    %c58 = arith.constant 58 : index
    %229 = memref.load %arg5[%c58] : memref<72xf32, #tpu.memory_space<smem>>
    %230 = vector.broadcast %229 : f32 to vector<16x32xf32>
    %231 = arith.mulf %230, %224 : vector<16x32xf32>
    %232 = arith.addf %223, %231 : vector<16x32xf32>
    %c1_72 = arith.constant 1 : index
    %c2_73 = arith.constant 2 : index
    %233 = vector.load %arg8[%c1_72, %c2_73] : memref<18x34xf32, #tpu.memory_space<vmem>>, vector<16x32xf32>
    %c23 = arith.constant 23 : index
    %234 = memref.load %arg5[%c23] : memref<72xf32, #tpu.memory_space<smem>>
    %235 = vector.broadcast %234 : f32 to vector<16x32xf32>
    %236 = arith.mulf %235, %233 : vector<16x32xf32>
    %237 = arith.addf %228, %236 : vector<16x32xf32>
    %c59 = arith.constant 59 : index
    %238 = memref.load %arg5[%c59] : memref<72xf32, #tpu.memory_space<smem>>
    %239 = vector.broadcast %238 : f32 to vector<16x32xf32>
    %240 = arith.mulf %239, %233 : vector<16x32xf32>
    %241 = arith.addf %232, %240 : vector<16x32xf32>
    %c2_74 = arith.constant 2 : index
    %c0_75 = arith.constant 0 : index
    %242 = vector.load %arg8[%c2_74, %c0_75] : memref<18x34xf32, #tpu.memory_space<vmem>>, vector<16x32xf32>
    %c24 = arith.constant 24 : index
    %243 = memref.load %arg5[%c24] : memref<72xf32, #tpu.memory_space<smem>>
    %244 = vector.broadcast %243 : f32 to vector<16x32xf32>
    %245 = arith.mulf %244, %242 : vector<16x32xf32>
    %246 = arith.addf %237, %245 : vector<16x32xf32>
    %c60 = arith.constant 60 : index
    %247 = memref.load %arg5[%c60] : memref<72xf32, #tpu.memory_space<smem>>
    %248 = vector.broadcast %247 : f32 to vector<16x32xf32>
    %249 = arith.mulf %248, %242 : vector<16x32xf32>
    %250 = arith.addf %241, %249 : vector<16x32xf32>
    %c2_76 = arith.constant 2 : index
    %c1_77 = arith.constant 1 : index
    %251 = vector.load %arg8[%c2_76, %c1_77] : memref<18x34xf32, #tpu.memory_space<vmem>>, vector<16x32xf32>
    %c25 = arith.constant 25 : index
    %252 = memref.load %arg5[%c25] : memref<72xf32, #tpu.memory_space<smem>>
    %253 = vector.broadcast %252 : f32 to vector<16x32xf32>
    %254 = arith.mulf %253, %251 : vector<16x32xf32>
    %255 = arith.addf %246, %254 : vector<16x32xf32>
    %c61 = arith.constant 61 : index
    %256 = memref.load %arg5[%c61] : memref<72xf32, #tpu.memory_space<smem>>
    %257 = vector.broadcast %256 : f32 to vector<16x32xf32>
    %258 = arith.mulf %257, %251 : vector<16x32xf32>
    %259 = arith.addf %250, %258 : vector<16x32xf32>
    %c2_78 = arith.constant 2 : index
    %c2_79 = arith.constant 2 : index
    %260 = vector.load %arg8[%c2_78, %c2_79] : memref<18x34xf32, #tpu.memory_space<vmem>>, vector<16x32xf32>
    %c26 = arith.constant 26 : index
    %261 = memref.load %arg5[%c26] : memref<72xf32, #tpu.memory_space<smem>>
    %262 = vector.broadcast %261 : f32 to vector<16x32xf32>
    %263 = arith.mulf %262, %260 : vector<16x32xf32>
    %264 = arith.addf %255, %263 : vector<16x32xf32>
    %c62 = arith.constant 62 : index
    %265 = memref.load %arg5[%c62] : memref<72xf32, #tpu.memory_space<smem>>
    %266 = vector.broadcast %265 : f32 to vector<16x32xf32>
    %267 = arith.mulf %266, %260 : vector<16x32xf32>
    %268 = arith.addf %259, %267 : vector<16x32xf32>
    %c0_80 = arith.constant 0 : index
    %c3_81 = arith.constant 3 : index
    %269 = arith.index_cast %1 : i32 to index
    %c0_82 = arith.constant 0 : index
    %270 = vector.load %arg2[%c0_80, %c3_81, %269, %c0_82] : memref<1x4x18x18xf32, #tpu.memory_space<vmem>>, vector<1x1x10x18xf32>
    %271 = vector.shape_cast %270 : vector<1x1x10x18xf32> to vector<10x18xf32>
    %cst_83 = arith.constant dense<0.000000e+00> : vector<10x34xf32>
    %272 = tpu.matmul %271, %3, %cst_83 {dimension_numbers = #tpu.dot_dimension_numbers<[1], [0], [0], [1], [0, 0, 1, 1], [], []>} : vector<10x18xf32>, vector<18x34xf32>, vector<10x34xf32> -> vector<10x34xf32>
    %cst_84 = arith.constant dense<0.000000e+00> : vector<18x34xf32>
    %273 = tpu.matmul %2, %272, %cst_84 {dimension_numbers = #tpu.dot_dimension_numbers<[1], [0], [0], [1], [0, 0, 1, 1], [], []>} : vector<18x10xf32>, vector<10x34xf32>, vector<18x34xf32> -> vector<18x34xf32>
    %c0_85 = arith.constant 0 : index
    %c0_86 = arith.constant 0 : index
    %274 = vector.load %arg8[%c0_85, %c0_86] : memref<18x34xf32, #tpu.memory_space<vmem>>, vector<18x34xf32>
    tpu.vector_store %arg8[%c0_85, %c0_86], %273 {strides = array<i32>} : memref<18x34xf32, #tpu.memory_space<vmem>>, vector<18x34xf32>,
    %c0_87 = arith.constant 0 : index
    %c0_88 = arith.constant 0 : index
    %275 = vector.load %arg8[%c0_87, %c0_88] : memref<18x34xf32, #tpu.memory_space<vmem>>, vector<16x32xf32>
    %c27 = arith.constant 27 : index
    %276 = memref.load %arg5[%c27] : memref<72xf32, #tpu.memory_space<smem>>
    %277 = vector.broadcast %276 : f32 to vector<16x32xf32>
    %278 = arith.mulf %277, %275 : vector<16x32xf32>
    %279 = arith.addf %264, %278 : vector<16x32xf32>
    %c63 = arith.constant 63 : index
    %280 = memref.load %arg5[%c63] : memref<72xf32, #tpu.memory_space<smem>>
    %281 = vector.broadcast %280 : f32 to vector<16x32xf32>
    %282 = arith.mulf %281, %275 : vector<16x32xf32>
    %283 = arith.addf %268, %282 : vector<16x32xf32>
    %c0_89 = arith.constant 0 : index
    %c1_90 = arith.constant 1 : index
    %284 = vector.load %arg8[%c0_89, %c1_90] : memref<18x34xf32, #tpu.memory_space<vmem>>, vector<16x32xf32>
    %c28 = arith.constant 28 : index
    %285 = memref.load %arg5[%c28] : memref<72xf32, #tpu.memory_space<smem>>
    %286 = vector.broadcast %285 : f32 to vector<16x32xf32>
    %287 = arith.mulf %286, %284 : vector<16x32xf32>
    %288 = arith.addf %279, %287 : vector<16x32xf32>
    %c64 = arith.constant 64 : index
    %289 = memref.load %arg5[%c64] : memref<72xf32, #tpu.memory_space<smem>>
    %290 = vector.broadcast %289 : f32 to vector<16x32xf32>
    %291 = arith.mulf %290, %284 : vector<16x32xf32>
    %292 = arith.addf %283, %291 : vector<16x32xf32>
    %c0_91 = arith.constant 0 : index
    %c2_92 = arith.constant 2 : index
    %293 = vector.load %arg8[%c0_91, %c2_92] : memref<18x34xf32, #tpu.memory_space<vmem>>, vector<16x32xf32>
    %c29 = arith.constant 29 : index
    %294 = memref.load %arg5[%c29] : memref<72xf32, #tpu.memory_space<smem>>
    %295 = vector.broadcast %294 : f32 to vector<16x32xf32>
    %296 = arith.mulf %295, %293 : vector<16x32xf32>
    %297 = arith.addf %288, %296 : vector<16x32xf32>
    %c65 = arith.constant 65 : index
    %298 = memref.load %arg5[%c65] : memref<72xf32, #tpu.memory_space<smem>>
    %299 = vector.broadcast %298 : f32 to vector<16x32xf32>
    %300 = arith.mulf %299, %293 : vector<16x32xf32>
    %301 = arith.addf %292, %300 : vector<16x32xf32>
    %c1_93 = arith.constant 1 : index
    %c0_94 = arith.constant 0 : index
    %302 = vector.load %arg8[%c1_93, %c0_94] : memref<18x34xf32, #tpu.memory_space<vmem>>, vector<16x32xf32>
    %c30 = arith.constant 30 : index
    %303 = memref.load %arg5[%c30] : memref<72xf32, #tpu.memory_space<smem>>
    %304 = vector.broadcast %303 : f32 to vector<16x32xf32>
    %305 = arith.mulf %304, %302 : vector<16x32xf32>
    %306 = arith.addf %297, %305 : vector<16x32xf32>
    %c66 = arith.constant 66 : index
    %307 = memref.load %arg5[%c66] : memref<72xf32, #tpu.memory_space<smem>>
    %308 = vector.broadcast %307 : f32 to vector<16x32xf32>
    %309 = arith.mulf %308, %302 : vector<16x32xf32>
    %310 = arith.addf %301, %309 : vector<16x32xf32>
    %c1_95 = arith.constant 1 : index
    %c1_96 = arith.constant 1 : index
    %311 = vector.load %arg8[%c1_95, %c1_96] : memref<18x34xf32, #tpu.memory_space<vmem>>, vector<16x32xf32>
    %c31 = arith.constant 31 : index
    %312 = memref.load %arg5[%c31] : memref<72xf32, #tpu.memory_space<smem>>
    %313 = vector.broadcast %312 : f32 to vector<16x32xf32>
    %314 = arith.mulf %313, %311 : vector<16x32xf32>
    %315 = arith.addf %306, %314 : vector<16x32xf32>
    %c67 = arith.constant 67 : index
    %316 = memref.load %arg5[%c67] : memref<72xf32, #tpu.memory_space<smem>>
    %317 = vector.broadcast %316 : f32 to vector<16x32xf32>
    %318 = arith.mulf %317, %311 : vector<16x32xf32>
    %319 = arith.addf %310, %318 : vector<16x32xf32>
    %c1_97 = arith.constant 1 : index
    %c2_98 = arith.constant 2 : index
    %320 = vector.load %arg8[%c1_97, %c2_98] : memref<18x34xf32, #tpu.memory_space<vmem>>, vector<16x32xf32>
    %c32 = arith.constant 32 : index
    %321 = memref.load %arg5[%c32] : memref<72xf32, #tpu.memory_space<smem>>
    %322 = vector.broadcast %321 : f32 to vector<16x32xf32>
    %323 = arith.mulf %322, %320 : vector<16x32xf32>
    %324 = arith.addf %315, %323 : vector<16x32xf32>
    %c68 = arith.constant 68 : index
    %325 = memref.load %arg5[%c68] : memref<72xf32, #tpu.memory_space<smem>>
    %326 = vector.broadcast %325 : f32 to vector<16x32xf32>
    %327 = arith.mulf %326, %320 : vector<16x32xf32>
    %328 = arith.addf %319, %327 : vector<16x32xf32>
    %c2_99 = arith.constant 2 : index
    %c0_100 = arith.constant 0 : index
    %329 = vector.load %arg8[%c2_99, %c0_100] : memref<18x34xf32, #tpu.memory_space<vmem>>, vector<16x32xf32>
    %c33 = arith.constant 33 : index
    %330 = memref.load %arg5[%c33] : memref<72xf32, #tpu.memory_space<smem>>
    %331 = vector.broadcast %330 : f32 to vector<16x32xf32>
    %332 = arith.mulf %331, %329 : vector<16x32xf32>
    %333 = arith.addf %324, %332 : vector<16x32xf32>
    %c69 = arith.constant 69 : index
    %334 = memref.load %arg5[%c69] : memref<72xf32, #tpu.memory_space<smem>>
    %335 = vector.broadcast %334 : f32 to vector<16x32xf32>
    %336 = arith.mulf %335, %329 : vector<16x32xf32>
    %337 = arith.addf %328, %336 : vector<16x32xf32>
    %c2_101 = arith.constant 2 : index
    %c1_102 = arith.constant 1 : index
    %338 = vector.load %arg8[%c2_101, %c1_102] : memref<18x34xf32, #tpu.memory_space<vmem>>, vector<16x32xf32>
    %c34 = arith.constant 34 : index
    %339 = memref.load %arg5[%c34] : memref<72xf32, #tpu.memory_space<smem>>
    %340 = vector.broadcast %339 : f32 to vector<16x32xf32>
    %341 = arith.mulf %340, %338 : vector<16x32xf32>
    %342 = arith.addf %333, %341 : vector<16x32xf32>
    %c70 = arith.constant 70 : index
    %343 = memref.load %arg5[%c70] : memref<72xf32, #tpu.memory_space<smem>>
    %344 = vector.broadcast %343 : f32 to vector<16x32xf32>
    %345 = arith.mulf %344, %338 : vector<16x32xf32>
    %346 = arith.addf %337, %345 : vector<16x32xf32>
    %c2_103 = arith.constant 2 : index
    %c2_104 = arith.constant 2 : index
    %347 = vector.load %arg8[%c2_103, %c2_104] : memref<18x34xf32, #tpu.memory_space<vmem>>, vector<16x32xf32>
    %c35 = arith.constant 35 : index
    %348 = memref.load %arg5[%c35] : memref<72xf32, #tpu.memory_space<smem>>
    %349 = vector.broadcast %348 : f32 to vector<16x32xf32>
    %350 = arith.mulf %349, %347 : vector<16x32xf32>
    %351 = arith.addf %342, %350 : vector<16x32xf32>
    %c71 = arith.constant 71 : index
    %352 = memref.load %arg5[%c71] : memref<72xf32, #tpu.memory_space<smem>>
    %353 = vector.broadcast %352 : f32 to vector<16x32xf32>
    %354 = arith.mulf %353, %347 : vector<16x32xf32>
    %355 = arith.addf %346, %354 : vector<16x32xf32>
    %c0_105 = arith.constant 0 : index
    %c0_106 = arith.constant 0 : index
    %c0_107 = arith.constant 0 : index
    %c0_108 = arith.constant 0 : index
    %356 = vector.load %arg7[%c0_105, %c0_106, %c0_107, %c0_108] : memref<1x2x16x32xf32, #tpu.memory_space<vmem>>, vector<1x1x16x32xf32>
    %357 = vector.shape_cast %356 : vector<1x1x16x32xf32> to vector<16x32xf32>
    %358 = vector.shape_cast %351 : vector<16x32xf32> to vector<1x1x16x32xf32>
    tpu.vector_store %arg7[%c0_105, %c0_106, %c0_107, %c0_108], %358 {strides = array<i32>} : memref<1x2x16x32xf32, #tpu.memory_space<vmem>>, vector<1x1x16x32xf32>,
    %c0_109 = arith.constant 0 : index
    %c1_110 = arith.constant 1 : index
    %c0_111 = arith.constant 0 : index
    %c0_112 = arith.constant 0 : index
    %359 = vector.load %arg7[%c0_109, %c1_110, %c0_111, %c0_112] : memref<1x2x16x32xf32, #tpu.memory_space<vmem>>, vector<1x1x16x32xf32>
    %360 = vector.shape_cast %359 : vector<1x1x16x32xf32> to vector<16x32xf32>
    %361 = vector.shape_cast %355 : vector<16x32xf32> to vector<1x1x16x32xf32>
    tpu.vector_store %arg7[%c0_109, %c1_110, %c0_111, %c0_112], %361 {strides = array<i32>} : memref<1x2x16x32xf32, #tpu.memory_space<vmem>>, vector<1x1x16x32xf32>,
    return
  }
  func.func @transform_0(%arg0: i32, %arg1: i32) -> (i32, i32, i32, i32) {
    %c0_i32 = arith.constant 0 : i32
    %c0_i32_0 = arith.constant 0 : i32
    %c0_i32_1 = arith.constant 0 : i32
    %c0_i32_2 = arith.constant 0 : i32
    return %arg0, %c0_i32, %c0_i32_0, %c0_i32_1 : i32, i32, i32, i32
  }
  func.func @transform_1(%arg0: i32, %arg1: i32) -> (i32, i32) {
    %c0_i32 = arith.constant 0 : i32
    %c0_i32_0 = arith.constant 0 : i32
    %c0_i32_1 = arith.constant 0 : i32
    return %c0_i32, %c0_i32_0 : i32, i32
  }
  func.func @transform_2(%arg0: i32, %arg1: i32) -> (i32, i32) {
    %c0_i32 = arith.constant 0 : i32
    %c0_i32_0 = arith.constant 0 : i32
    %c0_i32_1 = arith.constant 0 : i32
    return %c0_i32, %c0_i32_0 : i32, i32
  }
  func.func @transform_3(%arg0: i32, %arg1: i32) -> i32 {
    %c0_i32 = arith.constant 0 : i32
    %c0_i32_0 = arith.constant 0 : i32
    return %c0_i32 : i32
  }
  func.func @transform_4(%arg0: i32, %arg1: i32) -> i32 {
    %c0_i32 = arith.constant 0 : i32
    %c0_i32_0 = arith.constant 0 : i32
    return %c0_i32 : i32
  }
  func.func @transform_5(%arg0: i32, %arg1: i32) -> (i32, i32, i32, i32) {
    %c0_i32 = arith.constant 0 : i32
    %c0_i32_0 = arith.constant 0 : i32
    %c0_i32_1 = arith.constant 0 : i32
    return %arg0, %c0_i32, %arg1, %c0_i32_0 : i32, i32, i32, i32
  }
}

</mosaic_0001>

<bundles_post_ra>
// kernel: tpu_custom_call.1
= control target key start
LH: loop header
LB: loop body
LE: loop exit
PB: predicated region body
PF: predicated region fallthrough
CT: control target
= control target key end

     0   :  { %s2758_s0 = inlined_call_operand.vmem [shape: f32[2,4,18,18], index: 0, kind: input, shape index: {}]   ;;  %s2759_s1 = inlined_call_operand.vmem [shape: f32[18,10], index: 1, kind: input, shape index: {}]   ;;  %s2760_s2 = inlined_call_operand.vmem [shape: f32[18,34], index: 2, kind: input, shape index: {}]   ;;  %s2761_s3 = inlined_call_operand.vmem [shape: f32[72], index: 3, kind: input, shape index: {}]   ;;  %s2762_s4 = inlined_call_operand.vmem [shape: f32[2], index: 4, kind: input, shape index: {}]   ;;  %s2763_s5 = inlined_call_operand.hbm [shape: f32[2,2,32,32], index: 5, kind: output, shape index: {}]  }
   0x1   :  { %2768 = sst [smem:[#allocation14_spill]] %s2758_s0 }
   0x2   :  { %10 = vsyncpa [#allocation5], 0 }
   0x3   :  { %11 = vsyncpa [#allocation7], 0 }
   0x4   :  { %12 = vsyncpa [#allocation4], 0 }
   0x5   :  { %14 = vsyncpa [#allocation4 + $0x1], 0  ;;  %s1932_s18 = smov 0   ;;  %s1934_s19 = smov 0  }
   0x6   :  { %s1936_s20 = smov 0   ;;  %s1938_s21 = smov 0  }
   0x7   :  { %s1940_s22 = smov 0   ;;  %s1942_s23 = smov 0  }
   0x8   :  { %s1944_s24 = smov 0   ;;  %s1946_s25 = smov 0  }
   0x9 LB: > { %s1548_s26 = sadd.s32 4294967295, %s1889_s25   ;;  %s1549_s27 = sadd.s32 4294967294, %s1889_s25   ;;  %s1889_s25 = sphi %s1946_s25, %s20_s25   ;;  %s1885_s24 = sphi %s1944_s24, %s2782_s24   ;;  %s1881_s23 = sphi %s1942_s23, %s2781_s23   ;;  %s1877_s22 = sphi %s1940_s22, %s2780_s22   ;;  %s1873_s21 = sphi %s1938_s21, %s2779_s21   ;;  %s1869_s20 = sphi %s1936_s20, %s2778_s20   ;;  %s1865_s19 = sphi %s1934_s19, %s2777_s19   ;;  %s1861_s18 = sphi %s1932_s18, %s2776_s18  }
   0xa   : > { %s29_s28 = sadd.s32 1, %s1881_s23  ;;  %s32_s29 = sadd.s32 1, %s1885_s24 }
   0xb   : > { %p30_p0 = scmp.ge.s32.totalorder %s29_s28, 2  ;;  %s151_s30 = sadd.s32 1, %s1869_s20 }
   0xc   : > { %p161_p1 = scmp.ne.s32.totalorder %s1869_s20, %s1865_s19  ;;  %p162_p2 = scmp.eq.s32.totalorder %s1548_s26, 3 }
   0xd   : > { %s2784_s28 = smov (%p30_p0, %s29_s28), 0  ;;  %s2786_s29 = smov (!%p30_p0, %s32_s29), %s1885_s24 }
   0xe   : > { %s147_s6 = ssub.s32 %s1881_s23, %s2784_s28  ;;  %p1984_p3 = por %p162_p2, %p161_p1 }
   0xf   : > { %p34_p4 = scmp.ge.s32.totalorder %s2786_s29, 2  ;;  %p167_p5 = scmp.ne.s32.totalorder %s1865_s19, %s1861_s18 }
  0x10   : > { %p168_p6 = scmp.eq.s32.totalorder %s1549_s27, 3  ;;  %p1550_p7 = scmp.ge.s32.totalorder %s1889_s25, 1 }
  0x11   : > { %s2788_s29 = smov (%p34_p4, %s2786_s29), 0  ;;  %p175_p9 = scmp.lt.s32.totalorder %s1889_s25, 5 }
  0x12   : > { %p1993_p8 = por %p168_p6, %p167_p5  ;;  %s146_s9 = ssub.s32 %s1885_s24, %s2788_s29 }
  0x13   : > { %s148_s10 = sor.u32 %s147_s6, %s146_s9  ;;  %p2000_p10 = pnand %p1550_p7, %p175_p9 }
  0x14   : > { %p149_p11 = scmp.eq.s32.totalorder %s148_s10, 0  ;;  %p2004_p12 = scmp.eq.s32.totalorder %s1548_s26, 0 }
  0x15   : > { %p1694_p13 = pneg %p2000_p10  ;;  %s193_s15 = sshll.u32 %s2761_s3, 4  ;;  %s194_s15 = int_to_ptr.vmem [resolvable:$true] %s193_s15 }
  0x16   : > { %s2014_s16 = scalar_select %p149_p11, %s1869_s20, %s151_s30  }
  0x17   : > { %p1695_p0 = pnand %p2004_p12, %p1694_p13  ;;  %s203_s6 = sshll.u32 %s2762_s4, 4  ;;  %s204_s6 = int_to_ptr.vmem [resolvable:$true] %s203_s6 }
  0x18   : > { %s1891_s26 = smov [#allocation3]   ;;  %s1892_s9 = smov [#allocation6]  }
  0x19   : > { %1697 = dma.vmem_to_smem (!%p1695_p0), %s194_s15, 16, %s1891_s26, [#allocation5]  }
  0x1a   : > { %1700 = dma.vmem_to_smem (!%p1695_p0), %s204_s6, 16, %s1892_s9, [#allocation7]  }
  0x1b   : > { %224 = sbr.rel (%p2000_p10) target bundleno = 698 (0x2ba), region = 40 }
  0x20   : > { %1848 = dma.done.wait (%p2004_p12), [#allocation5], 16  }
  0x21   : > { %1850 = vsyncadd (%p2004_p12), [#allocation5], 4294967280 }
  0x22   : > { %1852 = dma.done.wait (%p2004_p12), [#allocation7], 16  }
  0x23   : > { %1854 = vsyncadd (%p2004_p12), [#allocation7], 4294967280 }
  0x24   : > { %236 = sfence }
  0x25   : > { %v271_v0 = vld [vmem:[%s2760_s2 + $0x10] sm:$0x3]  ;;  %vm286_vm0 = vcmask 1041408   ;;  %v270_v1 = vld [vmem:[%s2760_s2 + $0x8] sm:$0xff]  ;;  %p259_p1 = scmp.lt.s32.totalorder %s1877_s22, 1  ;;  %v269_v2 = vld [vmem:[%s2760_s2] sm:$0xff] }
  0x26   : > { %1561 = vmatpush.msk.msra.mxu0 %vm286_vm0, %v271_v0  ;;  %1588 = vmatpush.msk.msra.mxu2 %vm286_vm0, %v271_v0  ;;  %s1559_s27 = sshll.u32 %s1873_s21, 3  ;;  %s2773_s0 = sld [smem:[#allocation14_spill]]  ;;  %vm279_vm1 = vcmask 146432   ;;  %v2067_v11 = vld [vmem:[%s2759_s1] sm:$0xff]  ;;  %vm313_vm2 = vcmask 80896   ;;  %v2075_v14 = vld [vmem:[%s2759_s1 + $0x8] sm:$0xff] }
  0x27   : > { %s260_s15 = scalar_select %p259_p1, %s1877_s22, 1  ;;  %v2085_v17 = vld [vmem:[%s2759_s1 + $0x10] sm:$0x3]  ;;  %vm352_vm3 = vcmask 277504   ;;  %vm355_vm4 = vcmask 271360   ;;  %vm1392_vm5 = vcmask 261120  }
  0x28   : > { %304 = vmatpush.msra.mxu0 %v270_v1  ;;  %591 = vmatpush.msra.mxu2 %v270_v1  ;;  %s2104_s6 = sld [smem:[#allocation3 + $0x1]] }
  0x29   : > { %s1677_s17 = smul.u32 96, %s260_s15  ;;  %s2108_s26 = sld [smem:[#allocation3 + $0x26]] }
  0x2a   : > { %305 = vmatpush.msra.mxu0 %v269_v2  ;;  %592 = vmatpush.msra.mxu2 %v269_v2  ;;  %s2119_s10 = sld [smem:[#allocation3 + $0x4]] }
  0x2b   : > { %s2135_s11 = sld [smem:[#allocation3 + $0x29]] }
  0x2c   : > { %s263_s9 = scalar_lea.vmem %s2773_s0, %s1677_s17  ;;  %1616 = vmatpush.msk.msrb.mxu0 %vm286_vm0, %v271_v0  ;;  %s1571_s17 = sld [smem:[#allocation3 + $0x2]] }
  0x2d   : > { %s2049_s30 = scalar_lea.vmem %s263_s9, %s1559_s27  ;;  %s1570_s27 = sld [smem:[#allocation3 + $0x25]] }
  0x2e   : > { %v277_v3 = vld [vmem:[%s2049_s30] sm:$0xff]  ;;  %v1586_v4 = vld [vmem:[%s2049_s30 + $0x18] sm:$0xff]  ;;  %866 = vmatpush.msrb.mxu0 %v270_v1  ;;  %v278_v5 = vld [vmem:[%s2049_s30 + $0x8] sm:$0x3]  ;;  %v372_v23 = vstv %s2104_s6  ;;  %s2764_s9 = smov 126   ;;  %s2139_s13 = sld [smem:[#allocation3 + $0x28]] }
  0x2f   : > { %1562 = vmatmul.msk.f32.vlgmr.msra.gmra.mxu0 %vm279_vm1, %v277_v3  ;;  %1589 = vmatmul.msk.f32.vlgmr.msra.gmra.mxu2 %vm279_vm1, %v1586_v4  ;;  %v1587_v6 = vld [vmem:[%s2049_s30 + $0x20] sm:$0x3]  ;;  %v1614_v7 = vld [vmem:[%s2049_s30 + $0x30] sm:$0xff]  ;;  %v1615_v8 = vld [vmem:[%s2049_s30 + $0x38] sm:$0x3]  ;;  %v414_v29 = vstv %s2108_s26  ;;  %s2141_s12 = sld [smem:[#allocation3 + $0x5]] }
  0x30   : > { %867 = vmatpush.msrb.mxu0 %v269_v2  ;;  %v1642_v18 = vld [vmem:[%s2049_s30 + $0x48] sm:$0xff]  ;;  %v1643_v19 = vld [vmem:[%s2049_s30 + $0x50] sm:$0x3]  ;;  %s2766_s30 = smov 127   ;;  %v442_v38 = vstv %s2119_s10  ;;  %s2153_s14 = sld [smem:[#allocation3 + $0x8]] }
  0x31   : > { %v484_v46 = vstv %s2135_s11  ;;  %s2158_s15 = sld [smem:[#allocation3 + $0x7]]  ;;  %s256_s0 = sand.u32 1, %s1865_s19  }
  0x32   : > { %v400_v21 = vstv %s1571_s17  ;;  %s2161_s17 = sld [smem:[#allocation3 + $0x2b]] }
  0x33   : > { %v386_v22 = vstv %s1570_s27  ;;  %s1584_s27 = sld [smem:[#allocation3 + $0x2c]] }
  0x34   : > { %v456_v47 = vstv %s2139_s13  ;;  %s1599_s6 = sld [smem:[#allocation3 + $0xb]] }
  0x35   : > { %v470_v48 = vstv %s2141_s12  ;;  %s2198_s26 = sld [smem:[#allocation3 + $0x2e]] }
  0x36   : > { %v540_v54 = vstv %s2153_s14  ;;  %s1597_s10 = sld [smem:[#allocation3 + $0xa]] }
  0x37   : > { %1563 = vmatmul.msk.f32.gmra.mxu0 %vm279_vm1, %v278_v5  ;;  %1590 = vmatmul.msk.f32.gmra.mxu2 %vm279_vm1, %v1587_v6  ;;  %v512_v55 = vstv %s2158_s15  ;;  %s1600_s11 = sld [smem:[#allocation3 + $0x2f]] }
  0x38   : > { %v526_v56 = vstv %s2161_s17  ;;  %s2217_s13 = sld [smem:[#allocation3 + $0xd]] }
  0x39   : > { %v554_v60 = vstv %s1584_s27  ;;  %s2227_s12 = sld [smem:[#allocation3 + $0x31]] }
  0x3a   : > { %s2232_s14 = sld [smem:[#allocation3 + $0x32]] }
  0x3b   : > { %s2235_s15 = sld [smem:[#allocation3 + $0xe]] }
  0x3c   : > { %s2243_s17 = sld [smem:[#allocation3 + $0x10]] }
  0x3d   : > { %s2247_s27 = sld [smem:[#allocation3 + $0x11]] }
  0x3f   : > { %1617 = vmatmul.msk.f32.vlgmr.msrb.gmra.mxu0 %vm279_vm1, %v1614_v7  ;;  %v675_v7 = vstv %s1599_s6  ;;  %s2250_s6 = sld [smem:[#allocation3 + $0x34]] }
  0x47   : > { %1618 = vmatmul.msk.f32.gmra.mxu0 %vm279_vm1, %v1615_v8  ;;  %v661_v8 = vstv %s2198_s26  ;;  %s2265_s26 = sld [smem:[#allocation3 + $0x35]] }
  0xac   : > { %v307_v9 = vpop.f32.mrf.mxu0 }
  0xb2   : > { %v594_v12 = vpop.f32.mrf.mxu2 }
  0xb4   : > { %v310_v10 = vpop.f32.mrf.mxu0 }
  0xb5   : > { %1564 = vmatpush.msk.msra.mxu1 %vm286_vm0, %v310_v10 }
  0xb7   : > { %341 = vmatpush.msra.mxu1 %v307_v9  ;;  %v647_v9 = vstv %s1597_s10  ;;  %s2277_s10 = sld [smem:[#allocation3 + $0x24]] }
  0xb8   : > { %1565 = vmatmul.msk.f32.vlgmr.msra.gmra.mxu1 %vm313_vm2, %v2067_v11 }
  0xb9   : > { %1644 = vmatpush.msk.msrb.mxu1 %vm286_vm0, %v271_v0 }
  0xba   : > { %v597_v15 = vpop.f32.mrf.mxu2 }
  0xbb   : > { %1141 = vmatpush.msrb.mxu1 %v270_v1  ;;  %1591 = vmatpush.msk.msra.mxu3 %vm286_vm0, %v597_v15 }
  0xbc   : > { %v869_v13 = vpop.f32.mrf.mxu0 }
  0xbd   : > { %1142 = vmatpush.msrb.mxu1 %v269_v2  ;;  %618 = vmatpush.msra.mxu3 %v594_v12 }
  0xbe   : > { %1592 = vmatmul.msk.f32.vlgmr.msra.gmra.mxu3 %vm313_vm2, %v2067_v11 }
  0xc0   : > { %1566 = vmatmul.msk.f32.gmra.mxu1 %vm313_vm2, %v2075_v14 }
  0xc4   : > { %v872_v16 = vpop.f32.mrf.mxu0 }
  0xc5   : > { %1619 = vmatpush.msk.msrb.mxu2 %vm286_vm0, %v872_v16  ;;  %v689_v16 = vstv %s1600_s11  ;;  %s2280_s11 = sld [smem:[#allocation3]] }
  0xc6   : > { %1593 = vmatmul.msk.f32.gmra.mxu3 %vm313_vm2, %v2075_v14 }
  0xc7   : > { %893 = vmatpush.msrb.mxu2 %v869_v13 }
  0xc8   : > { %1567 = vmatmul.msk.f32.gmra.mxu1 %vm313_vm2, %v2085_v17  ;;  %1620 = vmatmul.msk.f32.vlgmr.msrb.gmra.mxu2 %vm313_vm2, %v2067_v11 }
  0xce   : > { %1594 = vmatmul.msk.f32.gmra.mxu3 %vm313_vm2, %v2085_v17 }
  0xd0   : > { %1645 = vmatmul.msk.f32.vlgmr.msrb.gmra.mxu1 %vm279_vm1, %v1642_v18  ;;  %1621 = vmatmul.msk.f32.gmra.mxu2 %vm313_vm2, %v2075_v14 }
  0xd8   : > { %1646 = vmatmul.msk.f32.gmra.mxu1 %vm279_vm1, %v1643_v19  ;;  %1622 = vmatmul.msk.f32.gmra.mxu2 %vm313_vm2, %v2085_v17 }
 0x135   : > { %v343_v20 = vpop.f32.mrf.mxu1 }
 0x136   : > { %353 = vst.msk [vmem:[#allocation2] sm:$0xff] %vm352_vm3, %v343_v20 }
 0x13d   : > { %v346_v24 = vpop.f32.mrf.mxu1  ;;  %v2110_v25 = vld [vmem:[#allocation2] sm:$0xff] }
 0x13e   : > { %354 = vst.msk [vmem:[#allocation2 + $0x8] sm:$0xff] %vm352_vm3, %v346_v24  ;;  %v401_v26 = vmul.f32 %v400_v21, %v2110_v25  ;;  %v387_v27 = vmul.f32 %v386_v22, %v2110_v25  ;;  %v373_v28 = vmul.f32 %v372_v23, %v2110_v25  ;;  %v415_v34 = vmul.f32 %v414_v29, %v2110_v25 }
 0x140   : > { %405 = vrot.lane.b32.xlu2 %v401_v26, %s2764_s9  ;;  %391 = vrot.lane.b32.xlu1 %v387_v27, %s2766_s30  ;;  %v731_v26 = vstv %s2227_s12  ;;  %v759_v27 = vstv %s2232_s14  ;;  %s2287_s12 = sld [smem:[#allocation6]] }
 0x141   : > { %377 = vrot.lane.b32.xlu0 %v373_v28, %s2766_s30  ;;  %v620_v37 = vpop.f32.mrf.mxu3  ;;  %v745_v28 = vstv %s2235_s15  ;;  %s2294_s14 = sld [smem:[#allocation3 + $0x3]] }
 0x142   : > { %s2305_s15 = sld [smem:[#allocation3 + $0x14]] }
 0x145   : > { %v2122_v30 = vld [vmem:[#allocation2 + $0x8] sm:$0xff]  ;;  %v349_v31 = vpop.f32.mrf.mxu1 }
 0x146   : > { %v402_v32 = vmul.f32 %v400_v21, %v2122_v30  ;;  %v388_v33 = vmul.f32 %v386_v22, %v2122_v30  ;;  %356 = vst.msk [vmem:[#allocation2 + $0x10] sm:$0x3] %vm355_vm4, %v349_v31  ;;  %v2130_v35 = vld [vmem:[#allocation2 + $0x1] sm:$0xff]  ;;  %v416_v41 = vmul.f32 %v414_v29, %v2122_v30  ;;  %v374_v42 = vmul.f32 %v372_v23, %v2122_v30 }
 0x147   : > { %v2132_v36 = vld [vmem:[#allocation2 + $0x2] sm:$0xff]  ;;  %v443_v40 = vmul.f32 %v442_v38, %v2130_v35  ;;  %v485_v50 = vmul.f32 %v484_v46, %v2130_v35  ;;  %v457_v51 = vmul.f32 %v456_v47, %v2130_v35  ;;  %v471_v52 = vmul.f32 %v470_v48, %v2130_v35 }
 0x148   : > { %407 = vrot.lane.b32.xlu2 %v402_v32, %s2764_s9  ;;  %393 = vrot.lane.b32.xlu1 %v388_v33, %s2766_s30  ;;  %629 = vst.msk [vmem:[#allocation2] sm:$0xff] %vm352_vm3, %v620_v37  ;;  %v541_v57 = vmul.f32 %v540_v54, %v2132_v36  ;;  %v513_v58 = vmul.f32 %v512_v55, %v2132_v36  ;;  %v717_v21 = vstv %s2217_s13  ;;  %s2284_s13 = sld [smem:[#allocation6 + $0x1]] }
 0x149   : > { %419 = vrot.lane.b32.xlu0 %v415_v34, %s2764_s9  ;;  %v623_v45 = vpop.f32.mrf.mxu3  ;;  %v527_v59 = vmul.f32 %v526_v56, %v2132_v36  ;;  %v555_v61 = vmul.f32 %v554_v60, %v2132_v36 }
 0x14b   : > { %v895_v20 = vpop.f32.mrf.mxu2 }
 0x14d   : > { %v1144_v39 = vpop.f32.mrf.mxu1  ;;  %v2148_v43 = vld [vmem:[#allocation2 + $0x9] sm:$0xff] }
 0x14e   : > { %v2150_v44 = vld [vmem:[#allocation2 + $0xa] sm:$0xff]  ;;  %v458_v62 = vmul.f32 %v456_v47, %v2148_v43  ;;  %v444_v63 = vmul.f32 %v442_v38, %v2148_v43  ;;  %v472_v0 = vmul.f32 %v470_v48, %v2148_v43  ;;  %v486_v2 = vmul.f32 %v484_v46, %v2148_v43 }
 0x14f   : > { %630 = vst.msk [vmem:[#allocation2 + $0x8] sm:$0xff] %vm352_vm3, %v623_v45  ;;  %v514_v1 = vmul.f32 %v512_v55, %v2150_v44  ;;  %v528_v3 = vmul.f32 %v526_v56, %v2150_v44  ;;  %v556_v4 = vmul.f32 %v554_v60, %v2150_v44  ;;  %v542_v5 = vmul.f32 %v540_v54, %v2150_v44  ;;  %v2206_v6 = vld [vmem:[#allocation2] sm:$0xff] }
 0x150   : > { %447 = vrot.lane.b32.xlu2 %v443_v40, %s2766_s30  ;;  %421 = vrot.lane.b32.xlu1 %v416_v41, %s2764_s9  ;;  %v676_v10 = vmul.f32 %v675_v7, %v2206_v6  ;;  %v648_v12 = vmul.f32 %v647_v9, %v2206_v6  ;;  %v815_v40 = vstv %s2247_s27  ;;  %v801_v41 = vstv %s2250_s6  ;;  %s2312_s27 = sld [smem:[#allocation3 + $0x13]] }
 0x151   : > { %379 = vrot.lane.b32.xlu0 %v374_v42, %s2766_s30  ;;  %v626_v53 = vpop.f32.mrf.mxu3  ;;  %v366_v54 = vstv %s2277_s10  ;;  %v360_v55 = vstv %s2280_s11  ;;  %s2332_s6 = sld [smem:[#allocation3 + $0x27]] }
 0x152   : > { %631 = vst.msk [vmem:[#allocation2 + $0x10] sm:$0x3] %vm355_vm4, %v626_v53  ;;  %v367_v56 = vmul.f32 %v366_v54, %v2110_v25  ;;  %v361_v60 = vmul.f32 %v360_v55, %v2110_v25  ;;  %s2347_s10 = sld [smem:[#allocation3 + $0x16]] }
 0x153   : > { %v898_v34 = vpop.f32.mrf.mxu2  ;;  %s2352_s11 = sld [smem:[#allocation3 + $0x6]] }
 0x155   : > { %v1147_v49 = vpop.f32.mrf.mxu1 }
 0x156   : > { %1647 = vmatpush.msk.msrb.mxu3 %vm286_vm0, %v1147_v49  ;;  %v2215_v13 = vld [vmem:[#allocation2 + $0x8] sm:$0xff]  ;;  %v829_v49 = vstv %s2265_s26  ;;  %s2336_s26 = sld [smem:[#allocation3 + $0x38]] }
 0x157   : > { %v677_v15 = vmul.f32 %v675_v7, %v2215_v13  ;;  %v2225_v18 = vld [vmem:[#allocation2 + $0x1] sm:$0xff]  ;;  %v691_v22 = vmul.f32 %v689_v16, %v2215_v13  ;;  %v663_v24 = vmul.f32 %v661_v8, %v2215_v13  ;;  %v368_v7 = vmul.f32 %v366_v54, %v2122_v30 }
 0x158   : > { %489 = vrot.lane.b32.xlu2 %v485_v50, %s2764_s9  ;;  %461 = vrot.lane.b32.xlu1 %v457_v51, %s2766_s30  ;;  %v2229_v19 = vld [vmem:[#allocation2 + $0x2] sm:$0xff]  ;;  %v718_v23 = vmul.f32 %v717_v21, %v2225_v18  ;;  %v732_v29 = vmul.f32 %v731_v26, %v2225_v18  ;;  %v760_v31 = vmul.f32 %v759_v27, %v2225_v18 }
 0x159   : > { %475 = vrot.lane.b32.xlu0 %v471_v52, %s2764_s9  ;;  %1168 = vmatpush.msrb.mxu3 %v1144_v39  ;;  %904 = vst.msk [vmem:[#allocation2] sm:$0xff] %vm352_vm3, %v895_v20  ;;  %v2254_v32 = vld [vmem:[#allocation2 + $0x9] sm:$0xff]  ;;  %v746_v37 = vmul.f32 %v745_v28, %v2225_v18  ;;  %v787_v39 = vstv %s2243_s17  ;;  %v816_v45 = vmul.f32 %v815_v40, %v2229_v19  ;;  %s2308_s17 = sld [smem:[#allocation3 + $0x37]] }
 0x15a   : > { %1648 = vmatmul.msk.f32.vlgmr.msrb.gmra.mxu3 %vm313_vm2, %v2067_v11  ;;  %v662_v11 = vmul.f32 %v661_v8, %v2206_v6  ;;  %v2256_v33 = vld [vmem:[#allocation2 + $0xa] sm:$0xff]  ;;  %v788_v42 = vmul.f32 %v787_v39, %v2229_v19  ;;  %v802_v47 = vmul.f32 %v801_v41, %v2229_v19  ;;  %v830_v50 = vmul.f32 %v829_v49, %v2229_v19 }
 0x15b   : > { %905 = vst.msk [vmem:[#allocation2 + $0x8] sm:$0xff] %vm352_vm3, %v898_v34  ;;  %v901_v46 = vpop.f32.mrf.mxu2  ;;  %v733_v51 = vmul.f32 %v731_v26, %v2254_v32  ;;  %v719_v52 = vmul.f32 %v717_v21, %v2254_v32 }
 0x15c   : > { %906 = vst.msk [vmem:[#allocation2 + $0x10] sm:$0x3] %vm355_vm4, %v901_v46 }
 0x15f   : > { %v936_v20 = vstv %s2308_s17  ;;  %s2373_s17 = sld [smem:[#allocation3 + $0x3b]] }
 0x160   : > { %545 = vrot.lane.b32.xlu2 %v541_v57, %s2764_s9  ;;  %517 = vrot.lane.b32.xlu1 %v513_v58, %s2766_s30  ;;  %v747_v57 = vmul.f32 %v745_v28, %v2254_v32  ;;  %v789_v58 = vmul.f32 %v787_v39, %v2256_v33 }
 0x161   : > { %531 = vrot.lane.b32.xlu0 %v527_v59, %s2766_s30  ;;  %v275_v59 = vstv %s2284_s13  ;;  %s2354_s13 = sld [smem:[#allocation3 + $0x2a]] }
 0x162   : > { %1649 = vmatmul.msk.f32.gmra.mxu3 %vm313_vm2, %v2075_v14  ;;  %v649_v14 = vmul.f32 %v647_v9, %v2215_v13  ;;  %v803_v9 = vmul.f32 %v801_v41, %v2256_v33  ;;  %v436_v41 = vstv %s2332_s6  ;;  %s2391_s6 = sld [smem:[#allocation3 + $0x2d]] }
 0x168   : > { %559 = vrot.lane.b32.xlu1 %v555_v61, %s2764_s9  ;;  %463 = vrot.lane.b32.xlu2 %v458_v62, %s2766_s30  ;;  %v761_v61 = vmul.f32 %v759_v27, %v2254_v32  ;;  %v273_v62 = vstv %s2287_s12  ;;  %s2364_s12 = sld [smem:[#allocation3 + $0x9]] }
 0x169   : > { %449 = vrot.lane.b32.xlu0 %v444_v63, %s2766_s30  ;;  %v369_v63 = vadd.f32 %v367_v56, %v275_v59  ;;  %v437_v56 = vmul.f32 %v436_v41, %v2130_v35 }
 0x16a   : > { %1650 = vmatmul.msk.f32.gmra.mxu3 %vm313_vm2, %v2085_v17  ;;  %v690_v17 = vmul.f32 %v689_v16, %v2206_v6  ;;  %v2325_v16 = vld [vmem:[#allocation2] sm:$0xff] }
 0x170   : > { %477 = vrot.lane.b32.xlu1 %v472_v0, %s2764_s9  ;;  %519 = vrot.lane.b32.xlu2 %v514_v1, %s2766_s30  ;;  %v363_v1 = vadd.f32 %v361_v60, %v273_v62 }
 0x171   : > { %491 = vrot.lane.b32.xlu0 %v486_v2, %s2764_s9 }
 0x178   : > { %533 = vrot.lane.b32.xlu1 %v528_v3, %s2766_s30  ;;  %561 = vrot.lane.b32.xlu2 %v556_v4, %s2764_s9  ;;  %v430_v4 = vstv %s2294_s14  ;;  %s2775_s14 = smov 127  }
 0x179   : > { %547 = vrot.lane.b32.xlu0 %v542_v5, %s2764_s9 }
 0x180   : > { %680 = vrot.lane.b32.xlu1 %v676_v10, %s2764_s9  ;;  %666 = vrot.lane.b32.xlu2 %v662_v11, %s2766_s30  ;;  %v831_v10 = vmul.f32 %v829_v49, %v2256_v33  ;;  %v431_v11 = vmul.f32 %v430_v4, %v2130_v35  ;;  %v2370_v35 = vld [vmem:[#allocation2 + $0x1] sm:$0xff] }
 0x181   : > { %652 = vrot.lane.b32.xlu0 %v648_v12, %s2766_s30  ;;  %v817_v12 = vmul.f32 %v815_v40, %v2256_v33 }
 0x188   : > { %654 = vrot.lane.b32.xlu1 %v649_v14, %s2766_s30  ;;  %682 = vrot.lane.b32.xlu2 %v677_v15, %s2764_s9  ;;  %v370_v15 = vadd.f32 %v368_v7, %v275_v59 }
 0x189   : > { %694 = vrot.lane.b32.xlu0 %v690_v17, %s2764_s9  ;;  %v950_v17 = vstv %s2305_s15  ;;  %s2368_s15 = sld [smem:[#allocation3 + $0x3a]] }
 0x190   : > { %696 = vrot.lane.b32.xlu1 %v691_v22, %s2764_s9  ;;  %722 = vrot.lane.b32.xlu2 %v718_v23, %s2766_s30  ;;  %v922_v23 = vstv %s2312_s27  ;;  %s2376_s27 = sld [smem:[#allocation3 + $0x17]] }
 0x191   : > { %668 = vrot.lane.b32.xlu0 %v663_v24, %s2766_s30  ;;  %v923_v34 = vmul.f32 %v922_v23, %v2325_v16 }
 0x198   : > { %736 = vrot.lane.b32.xlu1 %v732_v29, %s2766_s30  ;;  %764 = vrot.lane.b32.xlu2 %v760_v31, %s2764_s9  ;;  %v951_v29 = vmul.f32 %v950_v17, %v2325_v16  ;;  %v937_v31 = vmul.f32 %v936_v20, %v2325_v16 }
 0x199   : > { %750 = vrot.lane.b32.xlu0 %v746_v37, %s2764_s9  ;;  %v362_v37 = vmul.f32 %v360_v55, %v2122_v30 }
 0x19a   : > { %v406_v38 = vpop.permute.xlu2 %405 }
 0x19b   : > { %v364_v40 = vadd.f32 %v362_v37, %v273_v62 }
 0x1a0   : > { %792 = vrot.lane.b32.xlu1 %v788_v42, %s2766_s30  ;;  %820 = vrot.lane.b32.xlu2 %v816_v45, %s2764_s9 }
 0x1a1   : > { %806 = vrot.lane.b32.xlu0 %v802_v47, %s2766_s30  ;;  %v438_v47 = vmul.f32 %v436_v41, %v2148_v43 }
 0x1a2   : > { %v2275_v48 = vpop.permute.xlu2 %407 }
 0x1a8   : > { %834 = vrot.lane.b32.xlu1 %v830_v50, %s2764_s9  ;;  %738 = vrot.lane.b32.xlu2 %v733_v51, %s2766_s30  ;;  %v964_v51 = vstv %s2336_s26  ;;  %s2396_s26 = sld [smem:[#allocation3 + $0x19]] }
 0x1a9   : > { %724 = vrot.lane.b32.xlu0 %v719_v52, %s2766_s30  ;;  %v965_v55 = vmul.f32 %v964_v51, %v2325_v16 }
 0x1aa   : > { %v448_v53 = vpop.permute.xlu2 %447 }
 0x1b0   : > { %752 = vrot.lane.b32.xlu1 %v747_v57, %s2764_s9  ;;  %794 = vrot.lane.b32.xlu2 %v789_v58, %s2766_s30 }
 0x1b1   : > { %766 = vrot.lane.b32.xlu0 %v761_v61, %s2764_s9  ;;  %v992_v61 = vstv %s2347_s10  ;;  %s2487_s10 = sld [smem:[#allocation3 + $0x40]] }
 0x1b2   : > { %v392_v0 = vpop.permute.xlu1 %391  ;;  %v2310_v2 = vpop.permute.xlu2 %489 }
 0x1b3   : > { %v397_v25 = vadd.f32 %v392_v0, %v369_v63  ;;  %v378_v3 = vpop.permute.xlu0 %377  ;;  %v500_v63 = vstv %s2352_s11  ;;  %s2401_s11 = sld [smem:[#allocation3 + $0x1a]] }
 0x1b4   : > { %v383_v5 = vadd.f32 %v378_v3, %v363_v1  ;;  %v506_v1 = vstv %s2354_s13  ;;  %v993_v3 = vmul.f32 %v992_v61, %v2370_v35  ;;  %v501_v7 = vmul.f32 %v500_v63, %v2132_v36  ;;  %s2491_s13 = sld [smem:[#allocation3 + $0x1c]] }
 0x1b6   : > { %v411_v8 = vadd.f32 %v406_v38, %v383_v5  ;;  %v2343_v38 = vld [vmem:[#allocation2 + $0x8] sm:$0xff] }
 0x1b7   : > { %v924_v49 = vmul.f32 %v922_v23, %v2343_v38  ;;  %v952_v50 = vmul.f32 %v950_v17, %v2343_v38  ;;  %v938_v5 = vmul.f32 %v936_v20, %v2343_v38  ;;  %v1034_v17 = vstv %s2373_s17  ;;  %s2516_s17 = sld [smem:[#allocation3 + $0x41]] }
 0x1b8   : > { %808 = vrot.lane.b32.xlu1 %v803_v9, %s2766_s30  ;;  %836 = vrot.lane.b32.xlu2 %v831_v10, %s2764_s9  ;;  %v433_v14 = vadd.f32 %v431_v11, %v411_v8 }
 0x1b9   : > { %822 = vrot.lane.b32.xlu0 %v817_v12, %s2764_s9  ;;  %v635_v12 = vstv %s2364_s12  ;;  %s1602_s12 = sld [smem:[#allocation3 + $0x30]] }
 0x1ba   : > { %v2329_v21 = vpop.permute.xlu2 %545  ;;  %v394_v22 = vpop.permute.xlu1 %393  ;;  %v453_v24 = vadd.f32 %v448_v53, %v433_v14 }
 0x1bb   : > { %v420_v26 = vpop.permute.xlu0 %419  ;;  %v398_v27 = vadd.f32 %v394_v22, %v370_v15  ;;  %v1020_v22 = vstv %s2376_s27  ;;  %s2527_s27 = sld [smem:[#allocation3 + $0x1f]] }
 0x1bc   : > { %v425_v28 = vadd.f32 %v420_v26, %v397_v25  ;;  %v966_v25 = vmul.f32 %v964_v51, %v2343_v38 }
 0x1be   : > { %v439_v57 = vadd.f32 %v437_v56, %v425_v28  ;;  %v1021_v28 = vmul.f32 %v1020_v22, %v2370_v35  ;;  %v502_v56 = vmul.f32 %v500_v63, %v2150_v44 }
 0x1c0   : > { %955 = vrot.lane.b32.xlu1 %v951_v29, %s2764_s9  ;;  %941 = vrot.lane.b32.xlu2 %v937_v31, %s2766_s30  ;;  %v432_v31 = vmul.f32 %v430_v4, %v2148_v43 }
 0x1c1   : > { %927 = vrot.lane.b32.xlu0 %v923_v34, %s2766_s30 }
 0x1c2   : > { %v422_v39 = vpop.permute.xlu1 %421  ;;  %v464_v42 = vpop.permute.xlu2 %463 }
 0x1c3   : > { %v426_v45 = vadd.f32 %v422_v39, %v398_v27  ;;  %v380_v46 = vpop.permute.xlu0 %379  ;;  %v1035_v27 = vmul.f32 %v1034_v17, %v2370_v35 }
 0x1c4   : > { %v384_v30 = vadd.f32 %v380_v46, %v364_v40  ;;  %v1062_v46 = vstv %s2396_s26  ;;  %s2534_s26 = sld [smem:[#allocation3 + $0x33]] }
 0x1c5   : > { %v440_v52 = vadd.f32 %v438_v47, %v426_v45  ;;  %v2427_v45 = vld [vmem:[#allocation2 + $0x2] sm:$0xff]  ;;  %v1090_v47 = vstv %s2401_s11  ;;  %s2544_s11 = sld [smem:[#allocation3 + $0x43]] }
 0x1c6   : > { %v412_v53 = vadd.f32 %v2275_v48, %v384_v30  ;;  %v1091_v51 = vmul.f32 %v1090_v47, %v2427_v45 }
 0x1c7   : > { %v2357_v54 = vadd.f32 %v464_v42, %v440_v52 }
 0x1c8   : > { %929 = vrot.lane.b32.xlu1 %v924_v49, %s2766_s30  ;;  %957 = vrot.lane.b32.xlu2 %v952_v50, %s2764_s9  ;;  %v434_v39 = vadd.f32 %v432_v31, %v412_v53  ;;  %v1063_v50 = vmul.f32 %v1062_v46, %v2427_v45 }
 0x1c9   : > { %969 = vrot.lane.b32.xlu0 %v965_v55, %s2764_s9 }
 0x1ca   : > { %v462_v58 = vpop.permute.xlu1 %461  ;;  %v2366_v48 = vpop.permute.xlu2 %519 }
 0x1cb   : > { %v467_v59 = vadd.f32 %v462_v58, %v439_v57  ;;  %v476_v60 = vpop.permute.xlu0 %475 }
 0x1cc   : > { %v481_v62 = vadd.f32 %v476_v60, %v453_v24  ;;  %v636_v24 = vmul.f32 %v635_v12, %v2206_v6  ;;  %v2449_v60 = vld [vmem:[#allocation2 + $0x9] sm:$0xff] }
 0x1cd   : > { %v495_v0 = vadd.f32 %v2310_v2, %v467_v59  ;;  %v507_v2 = vmul.f32 %v506_v1, %v2132_v36  ;;  %v1006_v36 = vstv %s2368_s15  ;;  %s2774_s15 = smov 126   ;;  %v994_v63 = vmul.f32 %v992_v61, %v2449_v60 }
 0x1ce   : > { %v503_v8 = vadd.f32 %v501_v7, %v481_v62  ;;  %v1007_v26 = vmul.f32 %v1006_v36, %v2370_v35  ;;  %v1008_v7 = vmul.f32 %v1006_v36, %v2449_v60 }
 0x1cf   : > { %v509_v10 = vadd.f32 %v507_v2, %v495_v0  ;;  %v508_v2 = vmul.f32 %v506_v1, %v2150_v44  ;;  %v637_v44 = vmul.f32 %v635_v12, %v2215_v13 }
 0x1d0   : > { %971 = vrot.lane.b32.xlu1 %v966_v25, %s2764_s9  ;;  %997 = vrot.lane.b32.xlu2 %v993_v3, %s2766_s30  ;;  %s2404_s9 = sld [smem:[#allocation3 + $0x3d]]  ;;  %v2452_v25 = vld [vmem:[#allocation2 + $0xa] sm:$0xff] }
 0x1d1   : > { %943 = vrot.lane.b32.xlu0 %v938_v5, %s2766_s30 }
 0x1d2   : > { %v518_v9 = vpop.permute.xlu1 %517  ;;  %v2394_v11 = vpop.permute.xlu2 %561 }
 0x1d3   : > { %v523_v14 = vadd.f32 %v518_v9, %v503_v8  ;;  %v532_v15 = vpop.permute.xlu0 %531 }
 0x1d4   : > { %v537_v20 = vadd.f32 %v532_v15, %v509_v10 }
 0x1d5   : > { %v551_v23 = vadd.f32 %v2329_v21, %v523_v14  ;;  %v641_v21 = vstv %s2391_s6  ;;  %s2532_s6 = sld [smem:[#allocation3 + $0xf]] }
 0x1d6   : > { %v642_v41 = vmul.f32 %v641_v21, %v2206_v6  ;;  %v1076_v49 = vstv %s2404_s9  ;;  %s2467_s9 = sld [smem:[#allocation3 + $0xc]]  ;;  %v643_v36 = vmul.f32 %v641_v21, %v2215_v13 }
 0x1d7   : > { %v2417_v29 = vadd.f32 %v636_v24, %v551_v23  ;;  %v1077_v52 = vmul.f32 %v1076_v49, %v2427_v45  ;;  %v1064_v23 = vmul.f32 %v1062_v46, %v2452_v25  ;;  %v1078_v21 = vmul.f32 %v1076_v49, %v2452_v25 }
 0x1d8   : > { %1011 = vrot.lane.b32.xlu1 %v1007_v26, %s2766_s30  ;;  %1039 = vrot.lane.b32.xlu2 %v1035_v27, %s2774_s15  ;;  %s2431_s30 = sld [smem:[#allocation3 + $0x3e]]  ;;  %v1036_v26 = vmul.f32 %v1034_v17, %v2449_v60 }
 0x1d9   : > { %1025 = vrot.lane.b32.xlu0 %v1021_v28, %s2774_s15 }
 0x1da   : > { %v560_v34 = vpop.permute.xlu1 %559  ;;  %v667_v37 = vpop.permute.xlu2 %666 }
 0x1db   : > { %v565_v40 = vadd.f32 %v560_v34, %v537_v20  ;;  %v450_v42 = vpop.permute.xlu0 %449  ;;  %v1022_v20 = vmul.f32 %v1020_v22, %v2449_v60 }
 0x1dc   : > { %v454_v30 = vadd.f32 %v450_v42, %v434_v39  ;;  %v705_v17 = vstv %s2467_s9  ;;  %s2615_s9 = sld [smem:[#allocation3 + $0x12]] }
 0x1dd   : > { %v644_v43 = vadd.f32 %v642_v41, %v565_v40  ;;  %v1170_v4 = vpop.f32.mrf.mxu3  ;;  %v706_v34 = vmul.f32 %v705_v17, %v2225_v18  ;;  %v1211_v41 = vstv %s2487_s10  ;;  %s2554_s10 = sld [smem:[#allocation3 + $0x20]] }
 0x1de   : > { %1179 = vst.msk [vmem:[#allocation2] sm:$0xff] %vm352_vm3, %v1170_v4  ;;  %v1104_v59 = vstv %s2431_s30  ;;  %s2484_s30 = sld [smem:[#allocation3 + $0x1d]] }
 0x1df   : > { %v2439_v6 = vadd.f32 %v667_v37, %v644_v43  ;;  %v1105_v5 = vmul.f32 %v1104_v59, %v2427_v45  ;;  %v1106_v31 = vmul.f32 %v1104_v59, %v2452_v25  ;;  %v1092_v37 = vmul.f32 %v1090_v47, %v2452_v25 }
 0x1e0   : > { %1067 = vrot.lane.b32.xlu1 %v1063_v50, %s2775_s14  ;;  %1095 = vrot.lane.b32.xlu2 %v1091_v51, %s2774_s15  ;;  %v711_v59 = vstv %s1602_s12  ;;  %s2574_s12 = sld [smem:[#allocation3 + $0x22]] }
 0x1e1   : > { %1081 = vrot.lane.b32.xlu0 %v1077_v52, %s2775_s14 }
 0x1e2   : > { %v478_v53 = vpop.permute.xlu1 %477  ;;  %v2445_v55 = vpop.permute.xlu2 %682 }
 0x1e3   : > { %v482_v57 = vadd.f32 %v478_v53, %v454_v30  ;;  %v492_v58 = vpop.permute.xlu0 %491  ;;  %v1197_v30 = vstv %s2491_s13  ;;  %s2569_s13 = sld [smem:[#allocation3 + $0x36]] }
 0x1e4   : > { %v496_v62 = vadd.f32 %v492_v58, %v2357_v54 }
 0x1e5   : > { %v504_v0 = vadd.f32 %v502_v56, %v482_v57  ;;  %v1173_v3 = vpop.f32.mrf.mxu3  ;;  %v2506_v40 = vld [vmem:[#allocation2] sm:$0xff] }
 0x1e6   : > { %1180 = vst.msk [vmem:[#allocation2 + $0x8] sm:$0xff] %vm352_vm3, %v1173_v3  ;;  %v510_v8 = vadd.f32 %v508_v2, %v496_v62  ;;  %v1212_v51 = vmul.f32 %v1211_v41, %v2506_v40  ;;  %v1198_v53 = vmul.f32 %v1197_v30, %v2506_v40  ;;  %v1239_v3 = vstv %s2516_s17  ;;  %s2578_s17 = sld [smem:[#allocation3 + $0x23]] }
 0x1e7   : > { %v524_v54 = vadd.f32 %v2366_v48, %v504_v0  ;;  %v712_v2 = vmul.f32 %v711_v59, %v2225_v18 }
 0x1e8   : > { %1109 = vrot.lane.b32.xlu1 %v1105_v5, %s2774_s15  ;;  %1013 = vrot.lane.b32.xlu2 %v1008_v7, %s2775_s14  ;;  %v713_v7 = vmul.f32 %v711_v59, %v2254_v32 }
 0x1e9   : > { %999 = vrot.lane.b32.xlu0 %v994_v63, %s2775_s14  ;;  %v1240_v63 = vmul.f32 %v1239_v3, %v2506_v40 }
 0x1ea   : > { %v534_v9 = vpop.permute.xlu1 %533  ;;  %v723_v10 = vpop.permute.xlu2 %722 }
 0x1eb   : > { %v538_v14 = vadd.f32 %v534_v9, %v510_v8  ;;  %v548_v15 = vpop.permute.xlu0 %547 }
 0x1ec   : > { %v552_v61 = vadd.f32 %v548_v15, %v524_v54 }
 0x1ed   : > { %v566_v48 = vadd.f32 %v2394_v11, %v538_v14  ;;  %v1176_v1 = vpop.f32.mrf.mxu3  ;;  %v2525_v56 = vld [vmem:[#allocation2 + $0x8] sm:$0xff] }
 0x1ee   : > { %v639_v24 = vadd.f32 %v637_v44, %v552_v61  ;;  %1181 = vst.msk [vmem:[#allocation2 + $0x10] sm:$0x3] %vm355_vm4, %v1176_v1  ;;  %v2548_v61 = vld [vmem:[#allocation2 + $0x1] sm:$0xff]  ;;  %v1267_v44 = vstv %s2527_s27  ;;  %v775_v1 = vstv %s2532_s6  ;;  %s2581_s6 = sld [smem:[#allocation3 + $0x46]] }
 0x1ef   : > { %v645_v27 = vadd.f32 %v643_v36, %v566_v48  ;;  %s1668_s27 = sld [smem:[#allocation3 + $0x47]] }
 0x1f0   : > { %1027 = vrot.lane.b32.xlu1 %v1022_v20, %s2774_s15  ;;  %1069 = vrot.lane.b32.xlu2 %v1064_v23, %s2775_s14  ;;  %v781_v20 = vstv %s2534_s26  ;;  %v1241_v23 = vmul.f32 %v1239_v3, %v2525_v56  ;;  %s2654_s26 = sld [smem:[#allocation3 + $0x39]] }
 0x1f1   : > { %1041 = vrot.lane.b32.xlu0 %v1036_v26, %s2774_s15  ;;  %v1213_v26 = vmul.f32 %v1211_v41, %v2525_v56 }
 0x1f2   : > { %v681_v13 = vpop.permute.xlu1 %680  ;;  %v2489_v11 = vpop.permute.xlu2 %764 }
 0x1f3   : > { %v653_v12 = vpop.permute.xlu0 %652 }
 0x1f4   : > { %v658_v22 = vadd.f32 %v653_v12, %v2417_v29  ;;  %v1225_v29 = vstv %s2484_s30  ;;  %s2551_s30 = sld [smem:[#allocation3 + $0x44]] }
 0x1f5   : > { %v1226_v50 = vmul.f32 %v1225_v29, %v2506_v40  ;;  %v1227_v0 = vmul.f32 %v1225_v29, %v2525_v56 }
 0x1f6   : > { %v686_v28 = vadd.f32 %v681_v13, %v658_v22  ;;  %v782_v13 = vmul.f32 %v781_v20, %v2229_v19 }
 0x1f8   : > { %1083 = vrot.lane.b32.xlu1 %v1078_v21, %s2775_s14  ;;  %1111 = vrot.lane.b32.xlu2 %v1106_v31, %s2774_s15  ;;  %v708_v39 = vadd.f32 %v706_v34, %v686_v28  ;;  %v1281_v34 = vstv %s2544_s11  ;;  %s2658_s11 = sld [smem:[#allocation3 + $0x18]] }
 0x1f9   : > { %1097 = vrot.lane.b32.xlu0 %v1092_v37, %s2774_s15  ;;  %v1282_v41 = vmul.f32 %v1281_v34, %v2548_v61 }
 0x1fa   : > { %v655_v42 = vpop.permute.xlu1 %654  ;;  %v2510_v46 = vpop.permute.xlu2 %820  ;;  %v728_v49 = vadd.f32 %v723_v10, %v708_v39  ;;  %v1309_v37 = vstv %s2551_s30  ;;  %v1295_v39 = vstv %s2554_s10  ;;  %s2664_s30 = sld [smem:[#allocation3 + $0x1b]] }
 0x1fb   : > { %v659_v43 = vadd.f32 %v655_v42, %v639_v24  ;;  %v695_v4 = vpop.permute.xlu0 %694  ;;  %v1268_v24 = vmul.f32 %v1267_v44, %v2548_v61  ;;  %v1310_v42 = vmul.f32 %v1309_v37, %v2548_v61  ;;  %s2670_s10 = sld [smem:[#allocation3 + $0x3f]] }
 0x1fc   : > { %v700_v47 = vadd.f32 %v695_v4, %v2439_v6 }
 0x1fd   : > { %v2519_v52 = vadd.f32 %v2445_v55, %v659_v43  ;;  %v1199_v55 = vmul.f32 %v1197_v30, %v2525_v56  ;;  %v1296_v30 = vmul.f32 %v1295_v39, %v2548_v61 }
 0x1fe   : > { %v714_v8 = vadd.f32 %v712_v2, %v700_v47 }
 0x200   : > { %1230 = vrot.lane.b32.xlu1 %v1226_v50, %s2774_s15  ;;  %1216 = vrot.lane.b32.xlu2 %v1212_v51, %s2775_s14 }
 0x201   : > { %1202 = vrot.lane.b32.xlu0 %v1198_v53, %s2775_s14 }
 0x202   : > { %v697_v6 = vpop.permute.xlu1 %696  ;;  %v739_v57 = vpop.permute.xlu2 %738 }
 0x203   : > { %v669_v58 = vpop.permute.xlu0 %668 }
 0x204   : > { %v673_v62 = vadd.f32 %v669_v58, %v645_v27  ;;  %v776_v27 = vmul.f32 %v775_v1, %v2229_v19  ;;  %v1365_v58 = vstv %s2578_s17  ;;  %s2685_s17 = sld [smem:[#allocation3 + $0x21]] }
 0x206   : > { %v701_v5 = vadd.f32 %v697_v6, %v673_v62  ;;  %v2601_v6 = vld [vmem:[#allocation2 + $0x2] sm:$0xff]  ;;  %v1351_v62 = vstv %s2581_s6  ;;  %s2687_s6 = sld [smem:[#allocation3 + $0x45]] }
 0x207   : > { %v1352_v3 = vmul.f32 %v1351_v62, %v2601_v6 }
 0x208   : > { %1204 = vrot.lane.b32.xlu1 %v1199_v55, %s2775_s14  ;;  %1232 = vrot.lane.b32.xlu2 %v1227_v0, %s2774_s15  ;;  %v715_v54 = vadd.f32 %v713_v7, %v701_v5  ;;  %v777_v7 = vmul.f32 %v775_v1, %v2256_v33  ;;  %v783_v1 = vmul.f32 %v781_v20, %v2256_v33 }
 0x209   : > { %1244 = vrot.lane.b32.xlu0 %v1240_v63, %s2774_s15 }
 0x20a   : > { %v737_v9 = vpop.permute.xlu1 %736  ;;  %v2542_v10 = vpop.permute.xlu2 %794  ;;  %v2546_v14 = vadd.f32 %v739_v57, %v715_v54  ;;  %v1337_v57 = vstv %s2574_s12  ;;  %v2613_v54 = vld [vmem:[#allocation2 + $0x9] sm:$0xff]  ;;  %s1658_s12 = sld [smem:[#allocation3 + $0x42]] }
 0x20b   : > { %v742_v15 = vadd.f32 %v737_v9, %v714_v8  ;;  %v751_v18 = vpop.permute.xlu0 %750  ;;  %v1338_v0 = vmul.f32 %v1337_v57, %v2601_v6 }
 0x20c   : > { %v756_v48 = vadd.f32 %v751_v18, %v728_v49  ;;  %v916_v49 = vstv %s2569_s13  ;;  %v1283_v18 = vmul.f32 %v1281_v34, %v2613_v54  ;;  %s1657_s13 = sld [smem:[#allocation3 + $0x1e]] }
 0x20d   : > { %v770_v36 = vadd.f32 %v2489_v11, %v742_v15  ;;  %v917_v51 = vmul.f32 %v916_v49, %v2325_v16  ;;  %v1297_v15 = vmul.f32 %v1295_v39, %v2613_v54  ;;  %v918_v20 = vmul.f32 %v916_v49, %v2343_v38 }
 0x20e   : > { %v778_v11 = vadd.f32 %v776_v27, %v756_v48  ;;  %v1269_v48 = vmul.f32 %v1267_v44, %v2613_v54  ;;  %v910_v44 = vstv %s2615_s9  ;;  %s1557_s9 = sshll.u32 %s256_s0, 5 }
 0x20f   : > { %v784_v28 = vadd.f32 %v782_v13, %v770_v36  ;;  %v2630_v13 = vld [vmem:[#allocation2 + $0xa] sm:$0xff]  ;;  %v912_v33 = vmul.f32 %v910_v44, %v2343_v38 }
 0x210   : > { %1246 = vrot.lane.b32.xlu1 %v1241_v23, %s2774_s15  ;;  %1272 = vrot.lane.b32.xlu2 %v1268_v24, %s2775_s14 }
 0x211   : > { %1218 = vrot.lane.b32.xlu0 %v1213_v26, %s2775_s14 }
 0x212   : > { %v793_v12 = vpop.permute.xlu1 %792  ;;  %v2572_v22 = vpop.permute.xlu2 %836 }
 0x213   : > { %v798_v21 = vadd.f32 %v793_v12, %v778_v11  ;;  %v807_v31 = vpop.permute.xlu0 %806  ;;  %v1353_v12 = vmul.f32 %v1351_v62, %v2630_v13  ;;  %v986_v62 = vstv %s2654_s26 }
 0x214   : > { %v812_v19 = vadd.f32 %v807_v31, %v784_v28  ;;  %v1339_v28 = vmul.f32 %v1337_v57, %v2630_v13  ;;  %v1311_v31 = vmul.f32 %v1309_v37, %v2613_v54 }
 0x215   : > { %v2584_v29 = vadd.f32 %v2510_v46, %v798_v21  ;;  %v707_v46 = vmul.f32 %v705_v17, %v2254_v32  ;;  %v1366_v32 = vmul.f32 %v1365_v58, %v2601_v6 }
 0x217   : > { %v709_v47 = vadd.f32 %v707_v46, %v2519_v52 }
 0x218   : > { %1286 = vrot.lane.b32.xlu1 %v1282_v41, %s2775_s14  ;;  %1314 = vrot.lane.b32.xlu2 %v1310_v42, %s2774_s15  ;;  %v1379_v42 = vstv %s1668_s27  ;;  %s2696_s27 = scalar_lea.vmem [#allocation8], %s1557_s9 }
 0x219   : > { %1300 = vrot.lane.b32.xlu0 %v1296_v30, %s2774_s15  ;;  %v1380_v46 = vmul.f32 %v1379_v42, %v2601_v6  ;;  %v1381_v37 = vmul.f32 %v1379_v42, %v2630_v13 }
 0x21a   : > { %v835_v43 = vpop.permute.xlu1 %834  ;;  %v942_v4 = vpop.permute.xlu2 %941 }
 0x21b   : > { %v840_v50 = vadd.f32 %v835_v43, %v812_v19  ;;  %v725_v53 = vpop.permute.xlu0 %724  ;;  %v911_v19 = vmul.f32 %v910_v44, %v2325_v16  ;;  %v1367_v43 = vmul.f32 %v1365_v58, %v2630_v13 }
 0x21c   : > { %v729_v59 = vadd.f32 %v725_v53, %v709_v47 }
 0x21d   : > { %v919_v55 = vadd.f32 %v917_v51, %v840_v50  ;;  %v913_v38 = vadd.f32 %v911_v19, %v2584_v29 }
 0x21f   : > { %v947_v17 = vadd.f32 %v942_v4, %v919_v55 }
 0x220   : > { %1342 = vrot.lane.b32.xlu1 %v1338_v0, %s2775_s14  ;;  %1370 = vrot.lane.b32.xlu2 %v1366_v32, %s2774_s15 }
 0x221   : > { %1356 = vrot.lane.b32.xlu0 %v1352_v3, %s2775_s14 }
 0x222   : > { %v753_v52 = vpop.permute.xlu1 %752  ;;  %v958_v5 = vpop.permute.xlu2 %957 }
 0x223   : > { %v757_v63 = vadd.f32 %v753_v52, %v729_v59  ;;  %v767_v2 = vpop.permute.xlu0 %766 }
 0x224   : > { %v771_v8 = vadd.f32 %v767_v2, %v2546_v14 }
 0x225   : > { %v779_v9 = vadd.f32 %v777_v7, %v757_v63 }
 0x226   : > { %v785_v14 = vadd.f32 %v783_v1, %v771_v8  ;;  %v1050_v8 = vstv %s2658_s11 }
 0x227   : > { %v799_v36 = vadd.f32 %v2542_v10, %v779_v9  ;;  %v1051_v1 = vmul.f32 %v1050_v8, %v2427_v45 }
 0x228   : > { %1302 = vrot.lane.b32.xlu1 %v1297_v15, %s2774_s15  ;;  %1288 = vrot.lane.b32.xlu2 %v1283_v18, %s2775_s14 }
 0x229   : > { %1274 = vrot.lane.b32.xlu0 %v1269_v48, %s2775_s14 }
 0x22a   : > { %v809_v23 = vpop.permute.xlu1 %808  ;;  %v998_v24 = vpop.permute.xlu2 %997 }
 0x22b   : > { %v813_v26 = vadd.f32 %v809_v23, %v785_v14  ;;  %v823_v27 = vpop.permute.xlu0 %822 }
 0x22c   : > { %v827_v11 = vadd.f32 %v823_v27, %v799_v36 }
 0x22d   : > { %v841_v10 = vadd.f32 %v2572_v22, %v813_v26  ;;  %v1185_v26 = vstv %s2664_s30 }
 0x22e   : > { %v914_v21 = vadd.f32 %v912_v33, %v827_v11  ;;  %v1186_v33 = vmul.f32 %v1185_v26, %v2506_v40 }
 0x22f   : > { %v920_v34 = vadd.f32 %v918_v20, %v841_v10  ;;  %v1191_v20 = vstv %s2670_s10 }
 0x230   : > { %1358 = vrot.lane.b32.xlu1 %v1353_v12, %s2775_s14  ;;  %1344 = vrot.lane.b32.xlu2 %v1339_v28, %s2775_s14  ;;  %s2652_s14 = sld [smem:[#allocation3 + $0x15]] }
 0x231   : > { %1316 = vrot.lane.b32.xlu0 %v1311_v31, %s2774_s15 }
 0x232   : > { %v956_v22 = vpop.permute.xlu1 %955  ;;  %v1040_v39 = vpop.permute.xlu2 %1039 }
 0x233   : > { %v928_v41 = vpop.permute.xlu0 %927 }
 0x234   : > { %v933_v30 = vadd.f32 %v928_v41, %v913_v38 }
 0x236   : > { %v961_v49 = vadd.f32 %v956_v22, %v933_v30  ;;  %v980_v57 = vstv %s2652_s14  ;;  %v988_v22 = vmul.f32 %v986_v62, %v2449_v60  ;;  %s1399_s14 = scalar_lea.sflag [#allocation4], %s256_s0 }
 0x237   : > { %v981_v0 = vmul.f32 %v980_v57, %v2370_v35  ;;  %v982_v19 = vmul.f32 %v980_v57, %v2449_v60 }
 0x238   : > { %1384 = vrot.lane.b32.xlu1 %v1380_v46, %s2774_s15  ;;  %1386 = vrot.lane.b32.xlu2 %v1381_v37, %s2774_s15 }
 0x239   : > { %1372 = vrot.lane.b32.xlu0 %v1367_v43, %s2774_s15  ;;  %s2661_s15 = sld [smem:[#allocation3 + $0x3c]]  ;;  %v983_v3 = vadd.f32 %v981_v0, %v961_v49  ;;  %v1052_v43 = vmul.f32 %v1050_v8, %v2452_v25 }
 0x23a   : > { %v930_v16 = vpop.permute.xlu1 %929  ;;  %v1096_v4 = vpop.permute.xlu2 %1095 }
 0x23b   : > { %v934_v29 = vadd.f32 %v930_v16, %v914_v21  ;;  %v970_v47 = vpop.permute.xlu0 %969  ;;  %v1003_v63 = vadd.f32 %v998_v24, %v983_v3  ;;  %v1255_v3 = vstv %s1657_s13 }
 0x23c   : > { %v975_v50 = vadd.f32 %v970_v47, %v947_v17  ;;  %v987_v17 = vmul.f32 %v986_v62, %v2370_v35  ;;  %v1193_v62 = vmul.f32 %v1191_v20, %v2525_v56 }
 0x23d   : > { %v962_v51 = vadd.f32 %v958_v5, %v934_v29 }
 0x23e   : > { %v989_v52 = vadd.f32 %v987_v17, %v975_v50 }
 0x23f   : > { %v1056_v18 = vstv %s2661_s15 }
 0x240   : > { %v1057_v36 = vmul.f32 %v1056_v18, %v2427_v45  ;;  %v1192_v45 = vmul.f32 %v1191_v20, %v2506_v40  ;;  %v1058_v40 = vmul.f32 %v1056_v18, %v2452_v25 }
 0x242   : > { %v972_v53 = vpop.permute.xlu1 %971  ;;  %v1014_v55 = vpop.permute.xlu2 %1013 }
 0x243   : > { %v944_v58 = vpop.permute.xlu0 %943 }
 0x244   : > { %v948_v59 = vadd.f32 %v944_v58, %v920_v34 }
 0x246   : > { %v976_v32 = vadd.f32 %v972_v53, %v948_v59 }
 0x248   : > { %v990_v38 = vadd.f32 %v988_v22, %v976_v32 }
 0x24a   : > { %v1012_v5 = vpop.permute.xlu1 %1011  ;;  %v1070_v48 = vpop.permute.xlu2 %1069  ;;  %v1018_v37 = vadd.f32 %v1014_v55, %v990_v38 }
 0x24b   : > { %v1017_v7 = vadd.f32 %v1012_v5, %v989_v52  ;;  %v1026_v2 = vpop.permute.xlu0 %1025  ;;  %v1256_v5 = vmul.f32 %v1255_v3, %v2548_v61 }
 0x24c   : > { %v1031_v15 = vadd.f32 %v1026_v2, %v1003_v63  ;;  %v1261_v2 = vstv %s1658_s12 }
 0x24d   : > { %v1045_v9 = vadd.f32 %v1040_v39, %v1017_v7  ;;  %v984_v39 = vadd.f32 %v982_v19, %v962_v51  ;;  %v1187_v51 = vmul.f32 %v1185_v26, %v2525_v56  ;;  %v1262_v56 = vmul.f32 %v1261_v2, %v2548_v61 }
 0x24e   : > { %v1053_v35 = vadd.f32 %v1051_v1, %v1031_v15 }
 0x24f   : > { %v1059_v23 = vadd.f32 %v1057_v36, %v1045_v9  ;;  %v1257_v36 = vmul.f32 %v1255_v3, %v2613_v54 }
 0x252   : > { %v1068_v14 = vpop.permute.xlu1 %1067  ;;  %v1112_v12 = vpop.permute.xlu2 %1111 }
 0x253   : > { %v1073_v27 = vadd.f32 %v1068_v14, %v1053_v35  ;;  %v1082_v44 = vpop.permute.xlu0 %1081 }
 0x254   : > { %v1087_v24 = vadd.f32 %v1082_v44, %v1059_v23 }
 0x255   : > { %v1101_v11 = vadd.f32 %v1096_v4, %v1073_v27 }
 0x257   : > { %v1188_v10 = vadd.f32 %v1186_v33, %v1101_v11  ;;  %v1263_v11 = vmul.f32 %v1261_v2, %v2613_v54  ;;  %v1325_v33 = vstv %s2685_s17 }
 0x25a   : > { %v1110_v28 = vpop.permute.xlu1 %1109  ;;  %v1217_v30 = vpop.permute.xlu2 %1216 }
 0x25b   : > { %v1115_v21 = vadd.f32 %v1110_v28, %v1087_v24  ;;  %v1000_v31 = vpop.permute.xlu0 %999 }
 0x25c   : > { %v1004_v41 = vadd.f32 %v1000_v31, %v984_v39 }
 0x25d   : > { %v1194_v34 = vadd.f32 %v1192_v45, %v1115_v21 }
 0x25f   : > { %v1222_v8 = vadd.f32 %v1217_v30, %v1194_v34  ;;  %v1326_v34 = vmul.f32 %v1325_v33, %v2601_v6 }
 0x262   : > { %v1028_v42 = vpop.permute.xlu1 %1027  ;;  %v1233_v58 = vpop.permute.xlu2 %1232 }
 0x263   : > { %v1032_v49 = vadd.f32 %v1028_v42, %v1004_v41  ;;  %v1042_v46 = vpop.permute.xlu0 %1041 }
 0x264   : > { %v1046_v16 = vadd.f32 %v1042_v46, %v1018_v37 }
 0x265   : > { %v1054_v29 = vadd.f32 %v1052_v43, %v1032_v49 }
 0x266   : > { %v1060_v4 = vadd.f32 %v1058_v40, %v1046_v16 }
 0x267   : > { %v1074_v50 = vadd.f32 %v1070_v48, %v1054_v29 }
 0x26a   : > { %v1084_v47 = vpop.permute.xlu1 %1083  ;;  %v1273_v7 = vpop.permute.xlu2 %1272 }
 0x26b   : > { %v1088_v53 = vadd.f32 %v1084_v47, %v1060_v4  ;;  %v1098_v57 = vpop.permute.xlu0 %1097 }
 0x26c   : > { %v1102_v60 = vadd.f32 %v1098_v57, %v1074_v50 }
 0x26d   : > { %v1116_v59 = vadd.f32 %v1112_v12, %v1088_v53  ;;  %v1331_v12 = vstv %s2687_s6 }
 0x26e   : > { %v1189_v55 = vadd.f32 %v1187_v51, %v1102_v60  ;;  %v1332_v22 = vmul.f32 %v1331_v12, %v2601_v6  ;;  %v1327_v6 = vmul.f32 %v1325_v33, %v2630_v13  ;;  %v1333_v53 = vmul.f32 %v1331_v12, %v2630_v13 }
 0x26f   : > { %v1195_v0 = vadd.f32 %v1193_v62, %v1116_v59 }
 0x272   : > { %v1231_v32 = vpop.permute.xlu1 %1230  ;;  %v1315_v23 = vpop.permute.xlu2 %1314 }
 0x273   : > { %v1203_v17 = vpop.permute.xlu0 %1202 }
 0x274   : > { %v1208_v25 = vadd.f32 %v1203_v17, %v1188_v10 }
 0x276   : > { %v1236_v52 = vadd.f32 %v1231_v32, %v1208_v25 }
 0x278   : > { %v1258_v63 = vadd.f32 %v1256_v5, %v1236_v52 }
 0x27a   : > { %v1205_v9 = vpop.permute.xlu1 %1204  ;;  %v1278_v20 = vadd.f32 %v1273_v7, %v1258_v63  ;;  %v1371_v28 = vpop.permute.xlu2 %1370 }
 0x27b   : > { %v1209_v15 = vadd.f32 %v1205_v9, %v1189_v55  ;;  %v1245_v18 = vpop.permute.xlu0 %1244 }
 0x27c   : > { %v1250_v48 = vadd.f32 %v1245_v18, %v1222_v8 }
 0x27d   : > { %v1237_v1 = vadd.f32 %v1233_v58, %v1209_v15 }
 0x27e   : > { %v1264_v35 = vadd.f32 %v1262_v56, %v1250_v48 }
 0x27f   : > { %v1259_v14 = vadd.f32 %v1257_v36, %v1237_v1 }
 0x282   : > { %v1247_v26 = vpop.permute.xlu1 %1246  ;;  %v1289_v30 = vpop.permute.xlu2 %1288 }
 0x283   : > { %v1219_v27 = vpop.permute.xlu0 %1218 }
 0x284   : > { %v1223_v44 = vadd.f32 %v1219_v27, %v1195_v0 }
 0x286   : > { %v1251_v24 = vadd.f32 %v1247_v26, %v1223_v44 }
 0x288   : > { %v1265_v61 = vadd.f32 %v1263_v11, %v1251_v24 }
 0x28a   : > { %v1287_v10 = vpop.permute.xlu1 %1286  ;;  %v1345_v29 = vpop.permute.xlu2 %1344  ;;  %v1293_v47 = vadd.f32 %v1289_v30, %v1265_v61 }
 0x28b   : > { %v1292_v21 = vadd.f32 %v1287_v10, %v1264_v35  ;;  %v1301_v45 = vpop.permute.xlu0 %1300 }
 0x28c   : > { %v1306_v31 = vadd.f32 %v1301_v45, %v1278_v20 }
 0x28d   : > { %v1320_v19 = vadd.f32 %v1315_v23, %v1292_v21 }
 0x28e   : > { %v1328_v39 = vadd.f32 %v1326_v34, %v1306_v31 }
 0x28f   : > { %v1334_v38 = vadd.f32 %v1332_v22, %v1320_v19 }
 0x292   : > { %v1343_v41 = vpop.permute.xlu1 %1342  ;;  %v1387_v58 = vpop.permute.xlu2 %1386 }
 0x293   : > { %v1348_v54 = vadd.f32 %v1343_v41, %v1328_v39  ;;  %v1357_v42 = vpop.permute.xlu0 %1356 }
 0x294   : > { %v1362_v59 = vadd.f32 %v1357_v42, %v1334_v38 }
 0x295   : > { %v1376_v49 = vadd.f32 %v1371_v28, %v1348_v54 }
 0x297   : > { %1393 = vst.msk [vmem:[%s2696_s27] sm:$0xff] %vm1392_vm5, %v1376_v49 }
 0x29a   : > { %v1303_v46 = vpop.permute.xlu1 %1302 }
 0x29b   : > { %v1275_v37 = vpop.permute.xlu0 %1274 }
 0x29c   : > { %v1279_v43 = vadd.f32 %v1275_v37, %v1259_v14 }
 0x29e   : > { %v1307_v16 = vadd.f32 %v1303_v46, %v1279_v43 }
 0x2a0   : > { %v1329_v40 = vadd.f32 %v1327_v6, %v1307_v16 }
 0x2a2   : > { %v1359_v4 = vpop.permute.xlu1 %1358  ;;  %v1349_v0 = vadd.f32 %v1345_v29, %v1329_v40 }
 0x2a3   : > { %v1317_v50 = vpop.permute.xlu0 %1316 }
 0x2a4   : > { %v1321_v57 = vadd.f32 %v1317_v50, %v1293_v47 }
 0x2a6   : > { %v1335_v60 = vadd.f32 %v1333_v53, %v1321_v57 }
 0x2a8   : > { %v1363_v51 = vadd.f32 %v1359_v4, %v1335_v60 }
 0x2aa   : > { %v1391_v62 = vadd.f32 %v1387_v58, %v1363_v51  ;;  %v1385_v55 = vpop.permute.xlu1 %1384 }
 0x2ab   : > { %v1390_v32 = vadd.f32 %v1385_v55, %v1362_v59  ;;  %v1373_v17 = vpop.permute.xlu0 %1372 }
 0x2ac   : > { %1670 = vst.msk [vmem:[%s2696_s27 + $0x18] sm:$0xff] %vm1392_vm5, %v1391_v62  ;;  %v1377_v3 = vadd.f32 %v1373_v17, %v1349_v0 }
 0x2ad   : > { %1669 = vst.msk [vmem:[%s2696_s27 + $0x10] sm:$0xff] %vm1392_vm5, %v1390_v32 }
 0x2ae   : > { %1394 = vst.msk [vmem:[%s2696_s27 + $0x8] sm:$0xff] %vm1392_vm5, %v1377_v3 }
 0x2af   : > { %s1672_s26 = sshll.u32 %s1873_s21, 1  ;;  %s1673_s11 = sshll.u32 %s1877_s22, 3 }
 0x2b0   : > { %s1410_s15 = sadd.s32 %s1673_s11, %s1672_s26  ;;  %s1423_s30 = sshll.u32 %s2696_s27, 4  ;;  %s1424_s30 = int_to_ptr.vmem [resolvable:$true] %s1423_s30 }
 0x2b1   : > { %s1674_s10 = sshll.u32 %s1410_s15, 3  ;;  %s1895_s6 = smov 256  }
 0x2b2   : > { %s1412_s17 = scalar_lea.hbm %s2763_s5, %s1674_s10  ;;  %1686 = sst [smem:[#allocation10]] (%p1984_p3), %s1895_s6 }
 0x2b3   : > { %s1425_s0 = sshll.u32 %s1412_s17, 4  ;;  %s1896_s9 = smov 512   ;;  %s1426_s0 = int_to_ptr.hbm [resolvable:$true] %s1425_s0 }
 0x2b4   : > { %1687 = sst [smem:[#allocation10 + $0x1]] (%p1984_p3), %s1896_s9  ;;  %s1897_s21 = smov 2  }
 0x2b5   : > { %1688 = sst [smem:[#allocation10 + $0x2]] (%p1984_p3), %s1897_s21  ;;  %s1898_s22 = smov 128  }
 0x2b6   : > { %1689 = sst [smem:[#allocation10 + $0x3]] (%p1984_p3), %s1898_s22  ;;  %s1899_s27 = smov 8  }
 0x2b7   : > { %1690 = sst [smem:[#allocation10 + $0x4]] (%p1984_p3), %s1898_s22  ;;  %s1900_s26 = smov [#allocation9]  }
 0x2b8   : > { %1691 = sst [smem:[#allocation10 + $0x5]] (%p1984_p3), %s1899_s27  ;;  %s1901_s11 = smov 0  }
 0x2b9   : > { %1692 = dma.general (%p1984_p3), %s1424_s30, 512, %s1426_s0, %s1399_s14, %s1900_s26, [#allocation10], %s1901_s11, 0  }
 0x2ba PF: > { %p1709_p2 = scmp.ge.s32.totalorder %s1889_s25, 2  ;;  %s1453_s15 = sand.u32 1, %s1861_s18  }
 0x2bb   : > { %s1454_s10 = scalar_lea.sflag [#allocation4], %s1453_s15 }
 0x2bc   : > { %p1702_p4 = pnand %p1709_p2, %p1993_p8 }
 0x2be   : > { %p1703_p5 = pneg %p1702_p4 }
 0x2c0   : > { %1856 = dma.done.wait (%p1703_p5), %s1454_s10, 512  }
 0x2c1   : > { %1858 = vsyncadd (%p1703_p5), %s1454_s10, 4294966784  ;;  %s20_s25 = sadd.s32 1, %s1889_s25   ;;  %s2776_s18 = smov %s1865_s19 }
 0x2c2   : > { %p17_p6 = scmp.ge.s32.totalorder %s20_s25, 6   ;;  %s2777_s19 = smov %s1869_s20 }
 0x2c3   : > { %s2778_s20 = smov %s2014_s16  ;;  %s2779_s21 = smov %s1881_s23 }
 0x2c4   : > { %s2780_s22 = smov %s1885_s24  ;;  %s2781_s23 = smov %s2784_s28 }
 0x2c5   : > { %s2782_s24 = smov %s2788_s29  ;;  %19 = sbr.rel (!%p17_p6) target bundleno = 9 (0x9), region = 94 }
 0x2ca   :  { %1460 = vsyncpa [#allocation4], 1 }
 0x2cb   :  { %1462 = vsyncpa [#allocation4 + $0x1], 1 }
 0x2cc   :  { %1463 = vsyncpa [#allocation5], 1 }
 0x2cd   :  { %1465 = vsyncpa [#allocation5 + $0x1], 1 }
 0x2ce   :  { %1466 = vsyncpa [#allocation7], 1 }

</bundles_post_ra>
